<compile_context>
chip_gen: v5e
topology: v5e:2x2
jax: 0.10.0
libtpu: 0.0.40
codegen_flags: <defaults>
</compile_context>

<pallas_src>
import jax
import jax.numpy as jnp
from jax.experimental import pallas as pl
from jax.experimental.pallas import tpu as pltpu


# ----------------------------------------------------------------------------
# Fused kernel: embeddings -> L x LSTM -> dense -> log_softmax, one invocation.
# ----------------------------------------------------------------------------
def _fused_forward_kernel(*refs):
    (idx1_ref, idx2_ref, emb1_ref, emb2_ref,
     h0_ref, c0_ref, dwt_ref, db_ref) = refs[:8]

    L, B, H = h0_ref.shape
    N = idx1_ref.shape[0]          # N = T * B
    T = N // B
    E1 = emb1_ref.shape[1]
    E2 = emb2_ref.shape[1]
    V1p = emb1_ref.shape[0]        # padded vocab1 + 1
    V2p = emb2_ref.shape[0]        # padded vocab2 + 1

    w_refs = refs[8:8 + 3 * L]                         # (wih_t, whh_t, bias) per layer
    lp_ref, hN_ref, cN_ref = refs[8 + 3 * L:8 + 3 * L + 3]

    # ---- Embedding lookup as one-hot matmuls (MXU-friendly in-kernel gather) ----
    iota1 = jax.lax.broadcasted_iota(jnp.int32, (N, V1p), 1)
    iota2 = jax.lax.broadcasted_iota(jnp.int32, (N, V2p), 1)
    oh1 = (iota1 == idx1_ref[...]).astype(jnp.float32)         # (N, V1p)
    oh2 = (iota2 == idx2_ref[...]).astype(jnp.float32)         # (N, V2p)
    e1 = jnp.dot(oh1, emb1_ref[...], preferred_element_type=jnp.float32)  # (N, E1)
    e2 = jnp.dot(oh2, emb2_ref[...], preferred_element_type=jnp.float32)  # (N, E2)
    # TODO(synk): nn.Dropout is identity in eval mode; training-mode masking not implemented.

    y_prev = None
    for l in range(L):
        wih_t = w_refs[3 * l][...]        # (I_l, 4H)
        whh_t = w_refs[3 * l + 1][...]    # (H, 4H)
        bias = w_refs[3 * l + 2][...]     # (1, 4H)

        # Hoisted input projection for the whole sequence: one matmul per layer.
        if l == 0:
            # Split W_ih rows so we never lane-concatenate e1 and e2.
            gx = (jnp.dot(e1, wih_t[0:E1, :], preferred_element_type=jnp.float32)
                  + jnp.dot(e2, wih_t[E1:E1 + E2, :], preferred_element_type=jnp.float32)
                  + bias)                                        # (N, 4H)
        else:
            gx = jnp.dot(y_prev, wih_t, preferred_element_type=jnp.float32) + bias

        h = h0_ref[l].astype(jnp.float32)                        # (B, H)
        c = c0_ref[l].astype(jnp.float32)                        # (B, H)

        ys = []
        for t in range(T):                                       # fully unrolled, static
            gates = gx[t * B:(t + 1) * B, :] + jnp.dot(
                h, whh_t, preferred_element_type=jnp.float32)    # (B, 4H)
            sg = jax.nn.sigmoid(gates)                           # full-width EUP
            th = jnp.tanh(gates)                                 # full-width EUP
            i_g = sg[:, 0 * H:1 * H]
            f_g = sg[:, 1 * H:2 * H]
            g_g = th[:, 2 * H:3 * H]
            o_g = sg[:, 3 * H:4 * H]
            c = f_g * c + i_g * g_g
            h = o_g * jnp.tanh(c)
            ys.append(h)
        y_prev = jnp.concatenate(ys, axis=0)                     # (N, H)

        hN_ref[l] = h.astype(hN_ref.dtype)
        cN_ref[l] = c.astype(cN_ref.dtype)

    # ---- Dense + LogSoftmax head ----
    logits = jnp.dot(y_prev, dwt_ref[...], preferred_element_type=jnp.float32) + db_ref[...]
    m = jnp.max(logits, axis=-1, keepdims=True)
    s = logits - m
    lse = jnp.log(jnp.sum(jnp.exp(s), axis=-1, keepdims=True))
    lp_ref[...] = (s - lse).astype(lp_ref.dtype)


# ----------------------------------------------------------------------------
# One-time parameter preparation (transposes, bias pre-add, table padding).
# ----------------------------------------------------------------------------
def prepare_params(params, arch):
    L = arch["num_layers_lstm"]

    def pad_rows8(a):
        pad = (-a.shape[0]) % 8
        return jnp.pad(a, ((0, pad), (0, 0))) if pad else a

    prep = {
        "emb1": pad_rows8(params["embedding1"].astype(jnp.float32)),
        "emb2": pad_rows8(params["embedding2"].astype(jnp.float32)),
        "dense_wt": jnp.transpose(params["dense_w"]).astype(jnp.float32),   # (H, V1)
        "dense_b": params["dense_b"].reshape(1, -1).astype(jnp.float32),    # (1, V1)
    }
    for l in range(L):
        prep[f"wih_t_l{l}"] = jnp.transpose(params[f"w_ih_l{l}"]).astype(jnp.float32)
        prep[f"whh_t_l{l}"] = jnp.transpose(params[f"w_hh_l{l}"]).astype(jnp.float32)
        prep[f"bias_l{l}"] = (params[f"b_ih_l{l}"] + params[f"b_hh_l{l}"]
                              ).reshape(1, -1).astype(jnp.float32)
    return prep


# ----------------------------------------------------------------------------
# Full model forward (single fused pallas_call).
# ----------------------------------------------------------------------------
def dual_input_lstm_forward(prep, arch, inputs, hidden):
    """inputs: (T, B, 2) int32 indices; hidden: (h0, c0) each (L, B, H)."""
    T, B, _ = inputs.shape
    H = arch["hidden_units_lstm"]
    L = arch["num_layers_lstm"]
    E1, E2 = arch["embedding_size_1"], arch["embedding_size_2"]
    V1 = prep["dense_wt"].shape[1]
    h0, c0 = hidden

    assert H % 8 == 0, "hidden size must be sublane-aligned"
    assert prep["wih_t_l0"].shape[0] == E1 + E2

    idx1 = inputs[..., 0].reshape(T * B, 1).astype(jnp.int32)
    idx2 = inputs[..., 1].reshape(T * B, 1).astype(jnp.int32)

    layer_args = []
    for l in range(L):
        layer_args += [prep[f"wih_t_l{l}"], prep[f"whh_t_l{l}"], prep[f"bias_l{l}"]]

    lp, hN, cN = pl.pallas_call(
        _fused_forward_kernel,
        out_shape=(
            jax.ShapeDtypeStruct((T * B, V1), jnp.float32),
            jax.ShapeDtypeStruct((L, B, H), jnp.float32),
            jax.ShapeDtypeStruct((L, B, H), jnp.float32),
        ),
    )(idx1, idx2, prep["emb1"], prep["emb2"],
      h0.astype(jnp.float32), c0.astype(jnp.float32),
      prep["dense_wt"], prep["dense_b"], *layer_args)

    return lp, (hN, cN)


# ----------------------------------------------------------------------------
# Pure-JAX reference for correctness checking.
# ----------------------------------------------------------------------------
def _reference_forward(params, arch, inputs, hidden):
    emb1, emb2 = params["embedding1"], params["embedding2"]
    h0_all, c0_all = hidden
    e1 = jnp.take(emb1, inputs[..., 0], axis=0)
    e2 = jnp.take(emb2, inputs[..., 1], axis=0)
    x = jnp.concatenate([e1, e2], axis=-1).astype(jnp.float32)

    L = arch["num_layers_lstm"]
    H = arch["hidden_units_lstm"]
    h_outs, c_outs = [], []
    for l in range(L):
        w_ih, w_hh = params[f"w_ih_l{l}"], params[f"w_hh_l{l}"]
        b = params[f"b_ih_l{l}"] + params[f"b_hh_l{l}"]
        h, c = h0_all[l], c0_all[l]
        ys = []
        for t in range(x.shape[0]):
            g = x[t] @ w_ih.T + h @ w_hh.T + b
            i = jax.nn.sigmoid(g[:, 0 * H:1 * H])
            f = jax.nn.sigmoid(g[:, 1 * H:2 * H])
            gg = jnp.tanh(g[:, 2 * H:3 * H])
            o = jax.nn.sigmoid(g[:, 3 * H:4 * H])
            c = f * c + i * gg
            h = o * jnp.tanh(c)
            ys.append(h)
        x = jnp.stack(ys, axis=0)
        h_outs.append(h)
        c_outs.append(c)

    logits = x.reshape(-1, H) @ params["dense_w"].T + params["dense_b"]
    lp = jax.nn.log_softmax(logits, axis=-1)
    return lp, (jnp.stack(h_outs, 0), jnp.stack(c_outs, 0))


# ----------------------------------------------------------------------------
# Deterministic parameter init (shapes match the PyTorch module).
# ----------------------------------------------------------------------------
def init_params(key, vocab_size1, vocab_size2, arch):
    E1, E2 = arch["embedding_size_1"], arch["embedding_size_2"]
    H, L = arch["hidden_units_lstm"], arch["num_layers_lstm"]
    r = arch["init_range"]
    I = E1 + E2

    keys = jax.random.split(key, 4 + 4 * L)
    params = {
        "embedding1": jax.random.normal(keys[0], (vocab_size1 + 1, E1), jnp.float32) * 0.1,
        "embedding2": jax.random.normal(keys[1], (vocab_size2 + 1, E2), jnp.float32) * 0.1,
        "dense_w": jax.random.uniform(keys[2], (vocab_size1, H), jnp.float32, -r, r),
        "dense_b": jnp.zeros((vocab_size1,), jnp.float32),
    }
    for l in range(L):
        in_sz = I if l == 0 else H
        k0, k1, k2, k3 = keys[4 + 4 * l: 8 + 4 * l]
        params[f"w_ih_l{l}"] = jax.random.uniform(k0, (4 * H, in_sz), jnp.float32, -r, r)
        params[f"w_hh_l{l}"] = jax.random.uniform(k1, (4 * H, H), jnp.float32, -r, r)
        params[f"b_ih_l{l}"] = jax.random.uniform(k2, (4 * H,), jnp.float32, -r, r)
        params[f"b_hh_l{l}"] = jax.random.uniform(k3, (4 * H,), jnp.float32, -r, r)
    return params


if __name__ == "__main__":
    arch = {
        "embedding_size_1": 16,
        "embedding_size_2": 16,
        "hidden_units_lstm": 32,
        "num_layers_lstm": 2,
        "dropout_prob": 0.1,
        "init_range": 0.1,
    }
    vocab_size1, vocab_size2 = 32, 24
    T, B = 8, 2

    key = jax.random.PRNGKey(0)
    k_param, k_in1, k_in2 = jax.random.split(key, 3)
    params = init_params(k_param, vocab_size1, vocab_size2, arch)
    prep = prepare_params(params, arch)            # one-time, not per forward

    in1 = jax.random.randint(k_in1, (T, B, 1), 0, vocab_size1 + 1, jnp.int32)
    in2 = jax.random.randint(k_in2, (T, B, 1), 0, vocab_size2 + 1, jnp.int32)
    inputs = jnp.concatenate([in1, in2], axis=-1)  # (T, B, 2)

    L, H = arch["num_layers_lstm"], arch["hidden_units_lstm"]
    hidden = (jnp.zeros((L, B, H), jnp.float32), jnp.zeros((L, B, H), jnp.float32))

    log_probs, (hN, cN) = dual_input_lstm_forward(prep, arch, inputs, hidden)
    jax.block_until_ready((log_probs, hN, cN))

    ref_lp, (ref_h, ref_c) = _reference_forward(params, arch, inputs, hidden)
    assert log_probs.shape == (T * B, vocab_size1)
    assert jnp.allclose(log_probs, ref_lp, atol=1e-4, rtol=1e-4)
    assert jnp.allclose(hN, ref_h, atol=1e-4, rtol=1e-4)
    assert jnp.allclose(cN, ref_c, atol=1e-4, rtol=1e-4)

    print("KERNEL_OK")
</pallas_src>

<mosaic_0001>
module attributes {stable_mosaic.version = 11 : i64} {
  func.func @_fused_forward_kernel(%arg0: memref<16x1xi32, #tpu.memory_space<vmem>>, %arg1: memref<16x1xi32, #tpu.memory_space<vmem>>, %arg2: memref<40x16xf32, #tpu.memory_space<vmem>>, %arg3: memref<32x16xf32, #tpu.memory_space<vmem>>, %arg4: memref<2x2x32xf32, #tpu.memory_space<vmem>>, %arg5: memref<2x2x32xf32, #tpu.memory_space<vmem>>, %arg6: memref<32x32xf32, #tpu.memory_space<vmem>>, %arg7: memref<1x32xf32, #tpu.memory_space<vmem>>, %arg8: memref<32x128xf32, #tpu.memory_space<vmem>>, %arg9: memref<32x128xf32, #tpu.memory_space<vmem>>, %arg10: memref<1x128xf32, #tpu.memory_space<vmem>>, %arg11: memref<32x128xf32, #tpu.memory_space<vmem>>, %arg12: memref<32x128xf32, #tpu.memory_space<vmem>>, %arg13: memref<1x128xf32, #tpu.memory_space<vmem>>, %arg14: memref<16x32xf32, #tpu.memory_space<vmem>>, %arg15: memref<2x2x32xf32, #tpu.memory_space<vmem>>, %arg16: memref<2x2x32xf32, #tpu.memory_space<vmem>>) attributes {dimension_semantics = [], scalar_prefetch = 0 : i64, scratch_operands = 0 : i64, tpu.core_type = #tpu.core_type<tc>} {
    %0 = tpu.iota {dimensions = array<i32: 1>} : vector<16x40xi32>
    %1 = tpu.iota {dimensions = array<i32: 1>} : vector<16x32xi32>
    %c0 = arith.constant 0 : index
    %c0_0 = arith.constant 0 : index
    %2 = vector.load %arg0[%c0, %c0_0] : memref<16x1xi32, #tpu.memory_space<vmem>>, vector<16x1xi32>
    %3 = vector.broadcast %2 : vector<16x1xi32> to vector<16x40xi32>
    %4 = arith.cmpi eq, %0, %3 : vector<16x40xi32>
    %5 = arith.extui %4 : vector<16x40xi1> to vector<16x40xi32>
    %6 = arith.sitofp %5 : vector<16x40xi32> to vector<16x40xf32>
    %c0_1 = arith.constant 0 : index
    %c0_2 = arith.constant 0 : index
    %7 = vector.load %arg1[%c0_1, %c0_2] : memref<16x1xi32, #tpu.memory_space<vmem>>, vector<16x1xi32>
    %8 = vector.broadcast %7 : vector<16x1xi32> to vector<16x32xi32>
    %9 = arith.cmpi eq, %1, %8 : vector<16x32xi32>
    %10 = arith.extui %9 : vector<16x32xi1> to vector<16x32xi32>
    %11 = arith.sitofp %10 : vector<16x32xi32> to vector<16x32xf32>
    %c0_3 = arith.constant 0 : index
    %c0_4 = arith.constant 0 : index
    %12 = vector.load %arg2[%c0_3, %c0_4] : memref<40x16xf32, #tpu.memory_space<vmem>>, vector<40x16xf32>
    %cst = arith.constant dense<0.000000e+00> : vector<16x16xf32>
    %13 = tpu.matmul %6, %12, %cst {dimension_numbers = #tpu.dot_dimension_numbers<[1], [0], [0], [1], [0, 0, 1, 1], [], []>} : vector<16x40xf32>, vector<40x16xf32>, vector<16x16xf32> -> vector<16x16xf32>
    %c0_5 = arith.constant 0 : index
    %c0_6 = arith.constant 0 : index
    %14 = vector.load %arg3[%c0_5, %c0_6] : memref<32x16xf32, #tpu.memory_space<vmem>>, vector<32x16xf32>
    %cst_7 = arith.constant dense<0.000000e+00> : vector<16x16xf32>
    %15 = tpu.matmul %11, %14, %cst_7 {dimension_numbers = #tpu.dot_dimension_numbers<[1], [0], [0], [1], [0, 0, 1, 1], [], []>} : vector<16x32xf32>, vector<32x16xf32>, vector<16x16xf32> -> vector<16x16xf32>
    %c0_8 = arith.constant 0 : index
    %c0_9 = arith.constant 0 : index
    %16 = vector.load %arg8[%c0_8, %c0_9] : memref<32x128xf32, #tpu.memory_space<vmem>>, vector<32x128xf32>
    %c0_10 = arith.constant 0 : index
    %c0_11 = arith.constant 0 : index
    %17 = vector.load %arg9[%c0_10, %c0_11] : memref<32x128xf32, #tpu.memory_space<vmem>>, vector<32x128xf32>
    %c0_12 = arith.constant 0 : index
    %c0_13 = arith.constant 0 : index
    %18 = vector.load %arg10[%c0_12, %c0_13] : memref<1x128xf32, #tpu.memory_space<vmem>>, vector<1x128xf32>
    %19 = vector.extract_strided_slice %16 {offsets = [0, 0], sizes = [16, 128], strides = [1, 1]} : vector<32x128xf32> to vector<16x128xf32>
    %cst_14 = arith.constant dense<0.000000e+00> : vector<16x128xf32>
    %20 = tpu.matmul %13, %19, %cst_14 {dimension_numbers = #tpu.dot_dimension_numbers<[1], [0], [0], [1], [0, 0, 1, 1], [], []>} : vector<16x16xf32>, vector<16x128xf32>, vector<16x128xf32> -> vector<16x128xf32>
    %21 = vector.extract_strided_slice %16 {offsets = [16, 0], sizes = [16, 128], strides = [1, 1]} : vector<32x128xf32> to vector<16x128xf32>
    %cst_15 = arith.constant dense<0.000000e+00> : vector<16x128xf32>
    %22 = tpu.matmul %15, %21, %cst_15 {dimension_numbers = #tpu.dot_dimension_numbers<[1], [0], [0], [1], [0, 0, 1, 1], [], []>} : vector<16x16xf32>, vector<16x128xf32>, vector<16x128xf32> -> vector<16x128xf32>
    %23 = arith.addf %20, %22 : vector<16x128xf32>
    %24 = vector.broadcast %18 : vector<1x128xf32> to vector<16x128xf32>
    %25 = arith.addf %23, %24 : vector<16x128xf32>
    %c0_16 = arith.constant 0 : index
    %c0_17 = arith.constant 0 : index
    %c0_18 = arith.constant 0 : index
    %26 = vector.load %arg4[%c0_16, %c0_17, %c0_18] : memref<2x2x32xf32, #tpu.memory_space<vmem>>, vector<1x2x32xf32>
    %27 = vector.shape_cast %26 : vector<1x2x32xf32> to vector<2x32xf32>
    %c0_19 = arith.constant 0 : index
    %c0_20 = arith.constant 0 : index
    %c0_21 = arith.constant 0 : index
    %28 = vector.load %arg5[%c0_19, %c0_20, %c0_21] : memref<2x2x32xf32, #tpu.memory_space<vmem>>, vector<1x2x32xf32>
    %29 = vector.shape_cast %28 : vector<1x2x32xf32> to vector<2x32xf32>
    %30 = vector.extract_strided_slice %25 {offsets = [0, 0], sizes = [2, 128], strides = [1, 1]} : vector<16x128xf32> to vector<2x128xf32>
    %cst_22 = arith.constant dense<0.000000e+00> : vector<2x128xf32>
    %31 = tpu.matmul %27, %17, %cst_22 {dimension_numbers = #tpu.dot_dimension_numbers<[1], [0], [0], [1], [0, 0, 1, 1], [], []>} : vector<2x32xf32>, vector<32x128xf32>, vector<2x128xf32> -> vector<2x128xf32>
    %32 = arith.addf %30, %31 : vector<2x128xf32>
    %33 = arith.negf %32 : vector<2x128xf32>
    %34 = math.exp %33 : vector<2x128xf32>
    %cst_23 = arith.constant 1.000000e+00 : f32
    %35 = vector.broadcast %cst_23 : f32 to vector<2x128xf32>
    %36 = arith.addf %35, %34 : vector<2x128xf32>
    %37 = arith.divf %35, %36 : vector<2x128xf32>
    %38 = math.tanh %32 : vector<2x128xf32>
    %39 = vector.extract_strided_slice %37 {offsets = [0, 0], sizes = [2, 32], strides = [1, 1]} : vector<2x128xf32> to vector<2x32xf32>
    %40 = vector.extract_strided_slice %37 {offsets = [0, 32], sizes = [2, 32], strides = [1, 1]} : vector<2x128xf32> to vector<2x32xf32>
    %41 = vector.extract_strided_slice %38 {offsets = [0, 64], sizes = [2, 32], strides = [1, 1]} : vector<2x128xf32> to vector<2x32xf32>
    %42 = vector.extract_strided_slice %37 {offsets = [0, 96], sizes = [2, 32], strides = [1, 1]} : vector<2x128xf32> to vector<2x32xf32>
    %43 = arith.mulf %40, %29 : vector<2x32xf32>
    %44 = arith.mulf %39, %41 : vector<2x32xf32>
    %45 = arith.addf %43, %44 : vector<2x32xf32>
    %46 = math.tanh %45 : vector<2x32xf32>
    %47 = arith.mulf %42, %46 : vector<2x32xf32>
    %48 = vector.extract_strided_slice %25 {offsets = [2, 0], sizes = [2, 128], strides = [1, 1]} : vector<16x128xf32> to vector<2x128xf32>
    %cst_24 = arith.constant dense<0.000000e+00> : vector<2x128xf32>
    %49 = tpu.matmul %47, %17, %cst_24 {dimension_numbers = #tpu.dot_dimension_numbers<[1], [0], [0], [1], [0, 0, 1, 1], [], []>} : vector<2x32xf32>, vector<32x128xf32>, vector<2x128xf32> -> vector<2x128xf32>
    %50 = arith.addf %48, %49 : vector<2x128xf32>
    %51 = arith.negf %50 : vector<2x128xf32>
    %52 = math.exp %51 : vector<2x128xf32>
    %cst_25 = arith.constant 1.000000e+00 : f32
    %53 = vector.broadcast %cst_25 : f32 to vector<2x128xf32>
    %54 = arith.addf %53, %52 : vector<2x128xf32>
    %55 = arith.divf %53, %54 : vector<2x128xf32>
    %56 = math.tanh %50 : vector<2x128xf32>
    %57 = vector.extract_strided_slice %55 {offsets = [0, 0], sizes = [2, 32], strides = [1, 1]} : vector<2x128xf32> to vector<2x32xf32>
    %58 = vector.extract_strided_slice %55 {offsets = [0, 32], sizes = [2, 32], strides = [1, 1]} : vector<2x128xf32> to vector<2x32xf32>
    %59 = vector.extract_strided_slice %56 {offsets = [0, 64], sizes = [2, 32], strides = [1, 1]} : vector<2x128xf32> to vector<2x32xf32>
    %60 = vector.extract_strided_slice %55 {offsets = [0, 96], sizes = [2, 32], strides = [1, 1]} : vector<2x128xf32> to vector<2x32xf32>
    %61 = arith.mulf %58, %45 : vector<2x32xf32>
    %62 = arith.mulf %57, %59 : vector<2x32xf32>
    %63 = arith.addf %61, %62 : vector<2x32xf32>
    %64 = math.tanh %63 : vector<2x32xf32>
    %65 = arith.mulf %60, %64 : vector<2x32xf32>
    %66 = vector.extract_strided_slice %25 {offsets = [4, 0], sizes = [2, 128], strides = [1, 1]} : vector<16x128xf32> to vector<2x128xf32>
    %cst_26 = arith.constant dense<0.000000e+00> : vector<2x128xf32>
    %67 = tpu.matmul %65, %17, %cst_26 {dimension_numbers = #tpu.dot_dimension_numbers<[1], [0], [0], [1], [0, 0, 1, 1], [], []>} : vector<2x32xf32>, vector<32x128xf32>, vector<2x128xf32> -> vector<2x128xf32>
    %68 = arith.addf %66, %67 : vector<2x128xf32>
    %69 = arith.negf %68 : vector<2x128xf32>
    %70 = math.exp %69 : vector<2x128xf32>
    %cst_27 = arith.constant 1.000000e+00 : f32
    %71 = vector.broadcast %cst_27 : f32 to vector<2x128xf32>
    %72 = arith.addf %71, %70 : vector<2x128xf32>
    %73 = arith.divf %71, %72 : vector<2x128xf32>
    %74 = math.tanh %68 : vector<2x128xf32>
    %75 = vector.extract_strided_slice %73 {offsets = [0, 0], sizes = [2, 32], strides = [1, 1]} : vector<2x128xf32> to vector<2x32xf32>
    %76 = vector.extract_strided_slice %73 {offsets = [0, 32], sizes = [2, 32], strides = [1, 1]} : vector<2x128xf32> to vector<2x32xf32>
    %77 = vector.extract_strided_slice %74 {offsets = [0, 64], sizes = [2, 32], strides = [1, 1]} : vector<2x128xf32> to vector<2x32xf32>
    %78 = vector.extract_strided_slice %73 {offsets = [0, 96], sizes = [2, 32], strides = [1, 1]} : vector<2x128xf32> to vector<2x32xf32>
    %79 = arith.mulf %76, %63 : vector<2x32xf32>
    %80 = arith.mulf %75, %77 : vector<2x32xf32>
    %81 = arith.addf %79, %80 : vector<2x32xf32>
    %82 = math.tanh %81 : vector<2x32xf32>
    %83 = arith.mulf %78, %82 : vector<2x32xf32>
    %84 = vector.extract_strided_slice %25 {offsets = [6, 0], sizes = [2, 128], strides = [1, 1]} : vector<16x128xf32> to vector<2x128xf32>
    %cst_28 = arith.constant dense<0.000000e+00> : vector<2x128xf32>
    %85 = tpu.matmul %83, %17, %cst_28 {dimension_numbers = #tpu.dot_dimension_numbers<[1], [0], [0], [1], [0, 0, 1, 1], [], []>} : vector<2x32xf32>, vector<32x128xf32>, vector<2x128xf32> -> vector<2x128xf32>
    %86 = arith.addf %84, %85 : vector<2x128xf32>
    %87 = arith.negf %86 : vector<2x128xf32>
    %88 = math.exp %87 : vector<2x128xf32>
    %cst_29 = arith.constant 1.000000e+00 : f32
    %89 = vector.broadcast %cst_29 : f32 to vector<2x128xf32>
    %90 = arith.addf %89, %88 : vector<2x128xf32>
    %91 = arith.divf %89, %90 : vector<2x128xf32>
    %92 = math.tanh %86 : vector<2x128xf32>
    %93 = vector.extract_strided_slice %91 {offsets = [0, 0], sizes = [2, 32], strides = [1, 1]} : vector<2x128xf32> to vector<2x32xf32>
    %94 = vector.extract_strided_slice %91 {offsets = [0, 32], sizes = [2, 32], strides = [1, 1]} : vector<2x128xf32> to vector<2x32xf32>
    %95 = vector.extract_strided_slice %92 {offsets = [0, 64], sizes = [2, 32], strides = [1, 1]} : vector<2x128xf32> to vector<2x32xf32>
    %96 = vector.extract_strided_slice %91 {offsets = [0, 96], sizes = [2, 32], strides = [1, 1]} : vector<2x128xf32> to vector<2x32xf32>
    %97 = arith.mulf %94, %81 : vector<2x32xf32>
    %98 = arith.mulf %93, %95 : vector<2x32xf32>
    %99 = arith.addf %97, %98 : vector<2x32xf32>
    %100 = math.tanh %99 : vector<2x32xf32>
    %101 = arith.mulf %96, %100 : vector<2x32xf32>
    %102 = vector.extract_strided_slice %25 {offsets = [8, 0], sizes = [2, 128], strides = [1, 1]} : vector<16x128xf32> to vector<2x128xf32>
    %cst_30 = arith.constant dense<0.000000e+00> : vector<2x128xf32>
    %103 = tpu.matmul %101, %17, %cst_30 {dimension_numbers = #tpu.dot_dimension_numbers<[1], [0], [0], [1], [0, 0, 1, 1], [], []>} : vector<2x32xf32>, vector<32x128xf32>, vector<2x128xf32> -> vector<2x128xf32>
    %104 = arith.addf %102, %103 : vector<2x128xf32>
    %105 = arith.negf %104 : vector<2x128xf32>
    %106 = math.exp %105 : vector<2x128xf32>
    %cst_31 = arith.constant 1.000000e+00 : f32
    %107 = vector.broadcast %cst_31 : f32 to vector<2x128xf32>
    %108 = arith.addf %107, %106 : vector<2x128xf32>
    %109 = arith.divf %107, %108 : vector<2x128xf32>
    %110 = math.tanh %104 : vector<2x128xf32>
    %111 = vector.extract_strided_slice %109 {offsets = [0, 0], sizes = [2, 32], strides = [1, 1]} : vector<2x128xf32> to vector<2x32xf32>
    %112 = vector.extract_strided_slice %109 {offsets = [0, 32], sizes = [2, 32], strides = [1, 1]} : vector<2x128xf32> to vector<2x32xf32>
    %113 = vector.extract_strided_slice %110 {offsets = [0, 64], sizes = [2, 32], strides = [1, 1]} : vector<2x128xf32> to vector<2x32xf32>
    %114 = vector.extract_strided_slice %109 {offsets = [0, 96], sizes = [2, 32], strides = [1, 1]} : vector<2x128xf32> to vector<2x32xf32>
    %115 = arith.mulf %112, %99 : vector<2x32xf32>
    %116 = arith.mulf %111, %113 : vector<2x32xf32>
    %117 = arith.addf %115, %116 : vector<2x32xf32>
    %118 = math.tanh %117 : vector<2x32xf32>
    %119 = arith.mulf %114, %118 : vector<2x32xf32>
    %120 = vector.extract_strided_slice %25 {offsets = [10, 0], sizes = [2, 128], strides = [1, 1]} : vector<16x128xf32> to vector<2x128xf32>
    %cst_32 = arith.constant dense<0.000000e+00> : vector<2x128xf32>
    %121 = tpu.matmul %119, %17, %cst_32 {dimension_numbers = #tpu.dot_dimension_numbers<[1], [0], [0], [1], [0, 0, 1, 1], [], []>} : vector<2x32xf32>, vector<32x128xf32>, vector<2x128xf32> -> vector<2x128xf32>
    %122 = arith.addf %120, %121 : vector<2x128xf32>
    %123 = arith.negf %122 : vector<2x128xf32>
    %124 = math.exp %123 : vector<2x128xf32>
    %cst_33 = arith.constant 1.000000e+00 : f32
    %125 = vector.broadcast %cst_33 : f32 to vector<2x128xf32>
    %126 = arith.addf %125, %124 : vector<2x128xf32>
    %127 = arith.divf %125, %126 : vector<2x128xf32>
    %128 = math.tanh %122 : vector<2x128xf32>
    %129 = vector.extract_strided_slice %127 {offsets = [0, 0], sizes = [2, 32], strides = [1, 1]} : vector<2x128xf32> to vector<2x32xf32>
    %130 = vector.extract_strided_slice %127 {offsets = [0, 32], sizes = [2, 32], strides = [1, 1]} : vector<2x128xf32> to vector<2x32xf32>
    %131 = vector.extract_strided_slice %128 {offsets = [0, 64], sizes = [2, 32], strides = [1, 1]} : vector<2x128xf32> to vector<2x32xf32>
    %132 = vector.extract_strided_slice %127 {offsets = [0, 96], sizes = [2, 32], strides = [1, 1]} : vector<2x128xf32> to vector<2x32xf32>
    %133 = arith.mulf %130, %117 : vector<2x32xf32>
    %134 = arith.mulf %129, %131 : vector<2x32xf32>
    %135 = arith.addf %133, %134 : vector<2x32xf32>
    %136 = math.tanh %135 : vector<2x32xf32>
    %137 = arith.mulf %132, %136 : vector<2x32xf32>
    %138 = vector.extract_strided_slice %25 {offsets = [12, 0], sizes = [2, 128], strides = [1, 1]} : vector<16x128xf32> to vector<2x128xf32>
    %cst_34 = arith.constant dense<0.000000e+00> : vector<2x128xf32>
    %139 = tpu.matmul %137, %17, %cst_34 {dimension_numbers = #tpu.dot_dimension_numbers<[1], [0], [0], [1], [0, 0, 1, 1], [], []>} : vector<2x32xf32>, vector<32x128xf32>, vector<2x128xf32> -> vector<2x128xf32>
    %140 = arith.addf %138, %139 : vector<2x128xf32>
    %141 = arith.negf %140 : vector<2x128xf32>
    %142 = math.exp %141 : vector<2x128xf32>
    %cst_35 = arith.constant 1.000000e+00 : f32
    %143 = vector.broadcast %cst_35 : f32 to vector<2x128xf32>
    %144 = arith.addf %143, %142 : vector<2x128xf32>
    %145 = arith.divf %143, %144 : vector<2x128xf32>
    %146 = math.tanh %140 : vector<2x128xf32>
    %147 = vector.extract_strided_slice %145 {offsets = [0, 0], sizes = [2, 32], strides = [1, 1]} : vector<2x128xf32> to vector<2x32xf32>
    %148 = vector.extract_strided_slice %145 {offsets = [0, 32], sizes = [2, 32], strides = [1, 1]} : vector<2x128xf32> to vector<2x32xf32>
    %149 = vector.extract_strided_slice %146 {offsets = [0, 64], sizes = [2, 32], strides = [1, 1]} : vector<2x128xf32> to vector<2x32xf32>
    %150 = vector.extract_strided_slice %145 {offsets = [0, 96], sizes = [2, 32], strides = [1, 1]} : vector<2x128xf32> to vector<2x32xf32>
    %151 = arith.mulf %148, %135 : vector<2x32xf32>
    %152 = arith.mulf %147, %149 : vector<2x32xf32>
    %153 = arith.addf %151, %152 : vector<2x32xf32>
    %154 = math.tanh %153 : vector<2x32xf32>
    %155 = arith.mulf %150, %154 : vector<2x32xf32>
    %156 = vector.extract_strided_slice %25 {offsets = [14, 0], sizes = [2, 128], strides = [1, 1]} : vector<16x128xf32> to vector<2x128xf32>
    %cst_36 = arith.constant dense<0.000000e+00> : vector<2x128xf32>
    %157 = tpu.matmul %155, %17, %cst_36 {dimension_numbers = #tpu.dot_dimension_numbers<[1], [0], [0], [1], [0, 0, 1, 1], [], []>} : vector<2x32xf32>, vector<32x128xf32>, vector<2x128xf32> -> vector<2x128xf32>
    %158 = arith.addf %156, %157 : vector<2x128xf32>
    %159 = arith.negf %158 : vector<2x128xf32>
    %160 = math.exp %159 : vector<2x128xf32>
    %cst_37 = arith.constant 1.000000e+00 : f32
    %161 = vector.broadcast %cst_37 : f32 to vector<2x128xf32>
    %162 = arith.addf %161, %160 : vector<2x128xf32>
    %163 = arith.divf %161, %162 : vector<2x128xf32>
    %164 = math.tanh %158 : vector<2x128xf32>
    %165 = vector.extract_strided_slice %163 {offsets = [0, 0], sizes = [2, 32], strides = [1, 1]} : vector<2x128xf32> to vector<2x32xf32>
    %166 = vector.extract_strided_slice %163 {offsets = [0, 32], sizes = [2, 32], strides = [1, 1]} : vector<2x128xf32> to vector<2x32xf32>
    %167 = vector.extract_strided_slice %164 {offsets = [0, 64], sizes = [2, 32], strides = [1, 1]} : vector<2x128xf32> to vector<2x32xf32>
    %168 = vector.extract_strided_slice %163 {offsets = [0, 96], sizes = [2, 32], strides = [1, 1]} : vector<2x128xf32> to vector<2x32xf32>
    %169 = arith.mulf %166, %153 : vector<2x32xf32>
    %170 = arith.mulf %165, %167 : vector<2x32xf32>
    %171 = arith.addf %169, %170 : vector<2x32xf32>
    %172 = math.tanh %171 : vector<2x32xf32>
    %173 = arith.mulf %168, %172 : vector<2x32xf32>
    %174 = tpu.concatenate %47, %65, %83, %101, %119, %137, %155, %173 in 0 : vector<2x32xf32>, vector<2x32xf32>, vector<2x32xf32>, vector<2x32xf32>, vector<2x32xf32>, vector<2x32xf32>, vector<2x32xf32>, vector<2x32xf32> -> vector<16x32xf32>
    %c0_38 = arith.constant 0 : index
    %c0_39 = arith.constant 0 : index
    %c0_40 = arith.constant 0 : index
    %175 = vector.load %arg15[%c0_38, %c0_39, %c0_40] : memref<2x2x32xf32, #tpu.memory_space<vmem>>, vector<1x2x32xf32>
    %176 = vector.shape_cast %175 : vector<1x2x32xf32> to vector<2x32xf32>
    %177 = vector.shape_cast %173 : vector<2x32xf32> to vector<1x2x32xf32>
    tpu.vector_store %arg15[%c0_38, %c0_39, %c0_40], %177 {strides = array<i32>} : memref<2x2x32xf32, #tpu.memory_space<vmem>>, vector<1x2x32xf32>,
    %c0_41 = arith.constant 0 : index
    %c0_42 = arith.constant 0 : index
    %c0_43 = arith.constant 0 : index
    %178 = vector.load %arg16[%c0_41, %c0_42, %c0_43] : memref<2x2x32xf32, #tpu.memory_space<vmem>>, vector<1x2x32xf32>
    %179 = vector.shape_cast %178 : vector<1x2x32xf32> to vector<2x32xf32>
    %180 = vector.shape_cast %171 : vector<2x32xf32> to vector<1x2x32xf32>
    tpu.vector_store %arg16[%c0_41, %c0_42, %c0_43], %180 {strides = array<i32>} : memref<2x2x32xf32, #tpu.memory_space<vmem>>, vector<1x2x32xf32>,
    %c0_44 = arith.constant 0 : index
    %c0_45 = arith.constant 0 : index
    %181 = vector.load %arg11[%c0_44, %c0_45] : memref<32x128xf32, #tpu.memory_space<vmem>>, vector<32x128xf32>
    %c0_46 = arith.constant 0 : index
    %c0_47 = arith.constant 0 : index
    %182 = vector.load %arg12[%c0_46, %c0_47] : memref<32x128xf32, #tpu.memory_space<vmem>>, vector<32x128xf32>
    %c0_48 = arith.constant 0 : index
    %c0_49 = arith.constant 0 : index
    %183 = vector.load %arg13[%c0_48, %c0_49] : memref<1x128xf32, #tpu.memory_space<vmem>>, vector<1x128xf32>
    %cst_50 = arith.constant dense<0.000000e+00> : vector<16x128xf32>
    %184 = tpu.matmul %174, %181, %cst_50 {dimension_numbers = #tpu.dot_dimension_numbers<[1], [0], [0], [1], [0, 0, 1, 1], [], []>} : vector<16x32xf32>, vector<32x128xf32>, vector<16x128xf32> -> vector<16x128xf32>
    %185 = vector.broadcast %183 : vector<1x128xf32> to vector<16x128xf32>
    %186 = arith.addf %184, %185 : vector<16x128xf32>
    %c1 = arith.constant 1 : index
    %c0_51 = arith.constant 0 : index
    %c0_52 = arith.constant 0 : index
    %187 = vector.load %arg4[%c1, %c0_51, %c0_52] : memref<2x2x32xf32, #tpu.memory_space<vmem>>, vector<1x2x32xf32>
    %188 = vector.shape_cast %187 : vector<1x2x32xf32> to vector<2x32xf32>
    %c1_53 = arith.constant 1 : index
    %c0_54 = arith.constant 0 : index
    %c0_55 = arith.constant 0 : index
    %189 = vector.load %arg5[%c1_53, %c0_54, %c0_55] : memref<2x2x32xf32, #tpu.memory_space<vmem>>, vector<1x2x32xf32>
    %190 = vector.shape_cast %189 : vector<1x2x32xf32> to vector<2x32xf32>
    %191 = vector.extract_strided_slice %186 {offsets = [0, 0], sizes = [2, 128], strides = [1, 1]} : vector<16x128xf32> to vector<2x128xf32>
    %cst_56 = arith.constant dense<0.000000e+00> : vector<2x128xf32>
    %192 = tpu.matmul %188, %182, %cst_56 {dimension_numbers = #tpu.dot_dimension_numbers<[1], [0], [0], [1], [0, 0, 1, 1], [], []>} : vector<2x32xf32>, vector<32x128xf32>, vector<2x128xf32> -> vector<2x128xf32>
    %193 = arith.addf %191, %192 : vector<2x128xf32>
    %194 = arith.negf %193 : vector<2x128xf32>
    %195 = math.exp %194 : vector<2x128xf32>
    %cst_57 = arith.constant 1.000000e+00 : f32
    %196 = vector.broadcast %cst_57 : f32 to vector<2x128xf32>
    %197 = arith.addf %196, %195 : vector<2x128xf32>
    %198 = arith.divf %196, %197 : vector<2x128xf32>
    %199 = math.tanh %193 : vector<2x128xf32>
    %200 = vector.extract_strided_slice %198 {offsets = [0, 0], sizes = [2, 32], strides = [1, 1]} : vector<2x128xf32> to vector<2x32xf32>
    %201 = vector.extract_strided_slice %198 {offsets = [0, 32], sizes = [2, 32], strides = [1, 1]} : vector<2x128xf32> to vector<2x32xf32>
    %202 = vector.extract_strided_slice %199 {offsets = [0, 64], sizes = [2, 32], strides = [1, 1]} : vector<2x128xf32> to vector<2x32xf32>
    %203 = vector.extract_strided_slice %198 {offsets = [0, 96], sizes = [2, 32], strides = [1, 1]} : vector<2x128xf32> to vector<2x32xf32>
    %204 = arith.mulf %201, %190 : vector<2x32xf32>
    %205 = arith.mulf %200, %202 : vector<2x32xf32>
    %206 = arith.addf %204, %205 : vector<2x32xf32>
    %207 = math.tanh %206 : vector<2x32xf32>
    %208 = arith.mulf %203, %207 : vector<2x32xf32>
    %209 = vector.extract_strided_slice %186 {offsets = [2, 0], sizes = [2, 128], strides = [1, 1]} : vector<16x128xf32> to vector<2x128xf32>
    %cst_58 = arith.constant dense<0.000000e+00> : vector<2x128xf32>
    %210 = tpu.matmul %208, %182, %cst_58 {dimension_numbers = #tpu.dot_dimension_numbers<[1], [0], [0], [1], [0, 0, 1, 1], [], []>} : vector<2x32xf32>, vector<32x128xf32>, vector<2x128xf32> -> vector<2x128xf32>
    %211 = arith.addf %209, %210 : vector<2x128xf32>
    %212 = arith.negf %211 : vector<2x128xf32>
    %213 = math.exp %212 : vector<2x128xf32>
    %cst_59 = arith.constant 1.000000e+00 : f32
    %214 = vector.broadcast %cst_59 : f32 to vector<2x128xf32>
    %215 = arith.addf %214, %213 : vector<2x128xf32>
    %216 = arith.divf %214, %215 : vector<2x128xf32>
    %217 = math.tanh %211 : vector<2x128xf32>
    %218 = vector.extract_strided_slice %216 {offsets = [0, 0], sizes = [2, 32], strides = [1, 1]} : vector<2x128xf32> to vector<2x32xf32>
    %219 = vector.extract_strided_slice %216 {offsets = [0, 32], sizes = [2, 32], strides = [1, 1]} : vector<2x128xf32> to vector<2x32xf32>
    %220 = vector.extract_strided_slice %217 {offsets = [0, 64], sizes = [2, 32], strides = [1, 1]} : vector<2x128xf32> to vector<2x32xf32>
    %221 = vector.extract_strided_slice %216 {offsets = [0, 96], sizes = [2, 32], strides = [1, 1]} : vector<2x128xf32> to vector<2x32xf32>
    %222 = arith.mulf %219, %206 : vector<2x32xf32>
    %223 = arith.mulf %218, %220 : vector<2x32xf32>
    %224 = arith.addf %222, %223 : vector<2x32xf32>
    %225 = math.tanh %224 : vector<2x32xf32>
    %226 = arith.mulf %221, %225 : vector<2x32xf32>
    %227 = vector.extract_strided_slice %186 {offsets = [4, 0], sizes = [2, 128], strides = [1, 1]} : vector<16x128xf32> to vector<2x128xf32>
    %cst_60 = arith.constant dense<0.000000e+00> : vector<2x128xf32>
    %228 = tpu.matmul %226, %182, %cst_60 {dimension_numbers = #tpu.dot_dimension_numbers<[1], [0], [0], [1], [0, 0, 1, 1], [], []>} : vector<2x32xf32>, vector<32x128xf32>, vector<2x128xf32> -> vector<2x128xf32>
    %229 = arith.addf %227, %228 : vector<2x128xf32>
    %230 = arith.negf %229 : vector<2x128xf32>
    %231 = math.exp %230 : vector<2x128xf32>
    %cst_61 = arith.constant 1.000000e+00 : f32
    %232 = vector.broadcast %cst_61 : f32 to vector<2x128xf32>
    %233 = arith.addf %232, %231 : vector<2x128xf32>
    %234 = arith.divf %232, %233 : vector<2x128xf32>
    %235 = math.tanh %229 : vector<2x128xf32>
    %236 = vector.extract_strided_slice %234 {offsets = [0, 0], sizes = [2, 32], strides = [1, 1]} : vector<2x128xf32> to vector<2x32xf32>
    %237 = vector.extract_strided_slice %234 {offsets = [0, 32], sizes = [2, 32], strides = [1, 1]} : vector<2x128xf32> to vector<2x32xf32>
    %238 = vector.extract_strided_slice %235 {offsets = [0, 64], sizes = [2, 32], strides = [1, 1]} : vector<2x128xf32> to vector<2x32xf32>
    %239 = vector.extract_strided_slice %234 {offsets = [0, 96], sizes = [2, 32], strides = [1, 1]} : vector<2x128xf32> to vector<2x32xf32>
    %240 = arith.mulf %237, %224 : vector<2x32xf32>
    %241 = arith.mulf %236, %238 : vector<2x32xf32>
    %242 = arith.addf %240, %241 : vector<2x32xf32>
    %243 = math.tanh %242 : vector<2x32xf32>
    %244 = arith.mulf %239, %243 : vector<2x32xf32>
    %245 = vector.extract_strided_slice %186 {offsets = [6, 0], sizes = [2, 128], strides = [1, 1]} : vector<16x128xf32> to vector<2x128xf32>
    %cst_62 = arith.constant dense<0.000000e+00> : vector<2x128xf32>
    %246 = tpu.matmul %244, %182, %cst_62 {dimension_numbers = #tpu.dot_dimension_numbers<[1], [0], [0], [1], [0, 0, 1, 1], [], []>} : vector<2x32xf32>, vector<32x128xf32>, vector<2x128xf32> -> vector<2x128xf32>
    %247 = arith.addf %245, %246 : vector<2x128xf32>
    %248 = arith.negf %247 : vector<2x128xf32>
    %249 = math.exp %248 : vector<2x128xf32>
    %cst_63 = arith.constant 1.000000e+00 : f32
    %250 = vector.broadcast %cst_63 : f32 to vector<2x128xf32>
    %251 = arith.addf %250, %249 : vector<2x128xf32>
    %252 = arith.divf %250, %251 : vector<2x128xf32>
    %253 = math.tanh %247 : vector<2x128xf32>
    %254 = vector.extract_strided_slice %252 {offsets = [0, 0], sizes = [2, 32], strides = [1, 1]} : vector<2x128xf32> to vector<2x32xf32>
    %255 = vector.extract_strided_slice %252 {offsets = [0, 32], sizes = [2, 32], strides = [1, 1]} : vector<2x128xf32> to vector<2x32xf32>
    %256 = vector.extract_strided_slice %253 {offsets = [0, 64], sizes = [2, 32], strides = [1, 1]} : vector<2x128xf32> to vector<2x32xf32>
    %257 = vector.extract_strided_slice %252 {offsets = [0, 96], sizes = [2, 32], strides = [1, 1]} : vector<2x128xf32> to vector<2x32xf32>
    %258 = arith.mulf %255, %242 : vector<2x32xf32>
    %259 = arith.mulf %254, %256 : vector<2x32xf32>
    %260 = arith.addf %258, %259 : vector<2x32xf32>
    %261 = math.tanh %260 : vector<2x32xf32>
    %262 = arith.mulf %257, %261 : vector<2x32xf32>
    %263 = vector.extract_strided_slice %186 {offsets = [8, 0], sizes = [2, 128], strides = [1, 1]} : vector<16x128xf32> to vector<2x128xf32>
    %cst_64 = arith.constant dense<0.000000e+00> : vector<2x128xf32>
    %264 = tpu.matmul %262, %182, %cst_64 {dimension_numbers = #tpu.dot_dimension_numbers<[1], [0], [0], [1], [0, 0, 1, 1], [], []>} : vector<2x32xf32>, vector<32x128xf32>, vector<2x128xf32> -> vector<2x128xf32>
    %265 = arith.addf %263, %264 : vector<2x128xf32>
    %266 = arith.negf %265 : vector<2x128xf32>
    %267 = math.exp %266 : vector<2x128xf32>
    %cst_65 = arith.constant 1.000000e+00 : f32
    %268 = vector.broadcast %cst_65 : f32 to vector<2x128xf32>
    %269 = arith.addf %268, %267 : vector<2x128xf32>
    %270 = arith.divf %268, %269 : vector<2x128xf32>
    %271 = math.tanh %265 : vector<2x128xf32>
    %272 = vector.extract_strided_slice %270 {offsets = [0, 0], sizes = [2, 32], strides = [1, 1]} : vector<2x128xf32> to vector<2x32xf32>
    %273 = vector.extract_strided_slice %270 {offsets = [0, 32], sizes = [2, 32], strides = [1, 1]} : vector<2x128xf32> to vector<2x32xf32>
    %274 = vector.extract_strided_slice %271 {offsets = [0, 64], sizes = [2, 32], strides = [1, 1]} : vector<2x128xf32> to vector<2x32xf32>
    %275 = vector.extract_strided_slice %270 {offsets = [0, 96], sizes = [2, 32], strides = [1, 1]} : vector<2x128xf32> to vector<2x32xf32>
    %276 = arith.mulf %273, %260 : vector<2x32xf32>
    %277 = arith.mulf %272, %274 : vector<2x32xf32>
    %278 = arith.addf %276, %277 : vector<2x32xf32>
    %279 = math.tanh %278 : vector<2x32xf32>
    %280 = arith.mulf %275, %279 : vector<2x32xf32>
    %281 = vector.extract_strided_slice %186 {offsets = [10, 0], sizes = [2, 128], strides = [1, 1]} : vector<16x128xf32> to vector<2x128xf32>
    %cst_66 = arith.constant dense<0.000000e+00> : vector<2x128xf32>
    %282 = tpu.matmul %280, %182, %cst_66 {dimension_numbers = #tpu.dot_dimension_numbers<[1], [0], [0], [1], [0, 0, 1, 1], [], []>} : vector<2x32xf32>, vector<32x128xf32>, vector<2x128xf32> -> vector<2x128xf32>
    %283 = arith.addf %281, %282 : vector<2x128xf32>
    %284 = arith.negf %283 : vector<2x128xf32>
    %285 = math.exp %284 : vector<2x128xf32>
    %cst_67 = arith.constant 1.000000e+00 : f32
    %286 = vector.broadcast %cst_67 : f32 to vector<2x128xf32>
    %287 = arith.addf %286, %285 : vector<2x128xf32>
    %288 = arith.divf %286, %287 : vector<2x128xf32>
    %289 = math.tanh %283 : vector<2x128xf32>
    %290 = vector.extract_strided_slice %288 {offsets = [0, 0], sizes = [2, 32], strides = [1, 1]} : vector<2x128xf32> to vector<2x32xf32>
    %291 = vector.extract_strided_slice %288 {offsets = [0, 32], sizes = [2, 32], strides = [1, 1]} : vector<2x128xf32> to vector<2x32xf32>
    %292 = vector.extract_strided_slice %289 {offsets = [0, 64], sizes = [2, 32], strides = [1, 1]} : vector<2x128xf32> to vector<2x32xf32>
    %293 = vector.extract_strided_slice %288 {offsets = [0, 96], sizes = [2, 32], strides = [1, 1]} : vector<2x128xf32> to vector<2x32xf32>
    %294 = arith.mulf %291, %278 : vector<2x32xf32>
    %295 = arith.mulf %290, %292 : vector<2x32xf32>
    %296 = arith.addf %294, %295 : vector<2x32xf32>
    %297 = math.tanh %296 : vector<2x32xf32>
    %298 = arith.mulf %293, %297 : vector<2x32xf32>
    %299 = vector.extract_strided_slice %186 {offsets = [12, 0], sizes = [2, 128], strides = [1, 1]} : vector<16x128xf32> to vector<2x128xf32>
    %cst_68 = arith.constant dense<0.000000e+00> : vector<2x128xf32>
    %300 = tpu.matmul %298, %182, %cst_68 {dimension_numbers = #tpu.dot_dimension_numbers<[1], [0], [0], [1], [0, 0, 1, 1], [], []>} : vector<2x32xf32>, vector<32x128xf32>, vector<2x128xf32> -> vector<2x128xf32>
    %301 = arith.addf %299, %300 : vector<2x128xf32>
    %302 = arith.negf %301 : vector<2x128xf32>
    %303 = math.exp %302 : vector<2x128xf32>
    %cst_69 = arith.constant 1.000000e+00 : f32
    %304 = vector.broadcast %cst_69 : f32 to vector<2x128xf32>
    %305 = arith.addf %304, %303 : vector<2x128xf32>
    %306 = arith.divf %304, %305 : vector<2x128xf32>
    %307 = math.tanh %301 : vector<2x128xf32>
    %308 = vector.extract_strided_slice %306 {offsets = [0, 0], sizes = [2, 32], strides = [1, 1]} : vector<2x128xf32> to vector<2x32xf32>
    %309 = vector.extract_strided_slice %306 {offsets = [0, 32], sizes = [2, 32], strides = [1, 1]} : vector<2x128xf32> to vector<2x32xf32>
    %310 = vector.extract_strided_slice %307 {offsets = [0, 64], sizes = [2, 32], strides = [1, 1]} : vector<2x128xf32> to vector<2x32xf32>
    %311 = vector.extract_strided_slice %306 {offsets = [0, 96], sizes = [2, 32], strides = [1, 1]} : vector<2x128xf32> to vector<2x32xf32>
    %312 = arith.mulf %309, %296 : vector<2x32xf32>
    %313 = arith.mulf %308, %310 : vector<2x32xf32>
    %314 = arith.addf %312, %313 : vector<2x32xf32>
    %315 = math.tanh %314 : vector<2x32xf32>
    %316 = arith.mulf %311, %315 : vector<2x32xf32>
    %317 = vector.extract_strided_slice %186 {offsets = [14, 0], sizes = [2, 128], strides = [1, 1]} : vector<16x128xf32> to vector<2x128xf32>
    %cst_70 = arith.constant dense<0.000000e+00> : vector<2x128xf32>
    %318 = tpu.matmul %316, %182, %cst_70 {dimension_numbers = #tpu.dot_dimension_numbers<[1], [0], [0], [1], [0, 0, 1, 1], [], []>} : vector<2x32xf32>, vector<32x128xf32>, vector<2x128xf32> -> vector<2x128xf32>
    %319 = arith.addf %317, %318 : vector<2x128xf32>
    %320 = arith.negf %319 : vector<2x128xf32>
    %321 = math.exp %320 : vector<2x128xf32>
    %cst_71 = arith.constant 1.000000e+00 : f32
    %322 = vector.broadcast %cst_71 : f32 to vector<2x128xf32>
    %323 = arith.addf %322, %321 : vector<2x128xf32>
    %324 = arith.divf %322, %323 : vector<2x128xf32>
    %325 = math.tanh %319 : vector<2x128xf32>
    %326 = vector.extract_strided_slice %324 {offsets = [0, 0], sizes = [2, 32], strides = [1, 1]} : vector<2x128xf32> to vector<2x32xf32>
    %327 = vector.extract_strided_slice %324 {offsets = [0, 32], sizes = [2, 32], strides = [1, 1]} : vector<2x128xf32> to vector<2x32xf32>
    %328 = vector.extract_strided_slice %325 {offsets = [0, 64], sizes = [2, 32], strides = [1, 1]} : vector<2x128xf32> to vector<2x32xf32>
    %329 = vector.extract_strided_slice %324 {offsets = [0, 96], sizes = [2, 32], strides = [1, 1]} : vector<2x128xf32> to vector<2x32xf32>
    %330 = arith.mulf %327, %314 : vector<2x32xf32>
    %331 = arith.mulf %326, %328 : vector<2x32xf32>
    %332 = arith.addf %330, %331 : vector<2x32xf32>
    %333 = math.tanh %332 : vector<2x32xf32>
    %334 = arith.mulf %329, %333 : vector<2x32xf32>
    %335 = tpu.concatenate %208, %226, %244, %262, %280, %298, %316, %334 in 0 : vector<2x32xf32>, vector<2x32xf32>, vector<2x32xf32>, vector<2x32xf32>, vector<2x32xf32>, vector<2x32xf32>, vector<2x32xf32>, vector<2x32xf32> -> vector<16x32xf32>
    %c1_72 = arith.constant 1 : index
    %c0_73 = arith.constant 0 : index
    %c0_74 = arith.constant 0 : index
    %336 = vector.load %arg15[%c1_72, %c0_73, %c0_74] : memref<2x2x32xf32, #tpu.memory_space<vmem>>, vector<1x2x32xf32>
    %337 = vector.shape_cast %336 : vector<1x2x32xf32> to vector<2x32xf32>
    %338 = vector.shape_cast %334 : vector<2x32xf32> to vector<1x2x32xf32>
    tpu.vector_store %arg15[%c1_72, %c0_73, %c0_74], %338 {strides = array<i32>} : memref<2x2x32xf32, #tpu.memory_space<vmem>>, vector<1x2x32xf32>,
    %c1_75 = arith.constant 1 : index
    %c0_76 = arith.constant 0 : index
    %c0_77 = arith.constant 0 : index
    %339 = vector.load %arg16[%c1_75, %c0_76, %c0_77] : memref<2x2x32xf32, #tpu.memory_space<vmem>>, vector<1x2x32xf32>
    %340 = vector.shape_cast %339 : vector<1x2x32xf32> to vector<2x32xf32>
    %341 = vector.shape_cast %332 : vector<2x32xf32> to vector<1x2x32xf32>
    tpu.vector_store %arg16[%c1_75, %c0_76, %c0_77], %341 {strides = array<i32>} : memref<2x2x32xf32, #tpu.memory_space<vmem>>, vector<1x2x32xf32>,
    %c0_78 = arith.constant 0 : index
    %c0_79 = arith.constant 0 : index
    %342 = vector.load %arg6[%c0_78, %c0_79] : memref<32x32xf32, #tpu.memory_space<vmem>>, vector<32x32xf32>
    %cst_80 = arith.constant dense<0.000000e+00> : vector<16x32xf32>
    %343 = tpu.matmul %335, %342, %cst_80 {dimension_numbers = #tpu.dot_dimension_numbers<[1], [0], [0], [1], [0, 0, 1, 1], [], []>} : vector<16x32xf32>, vector<32x32xf32>, vector<16x32xf32> -> vector<16x32xf32>
    %c0_81 = arith.constant 0 : index
    %c0_82 = arith.constant 0 : index
    %344 = vector.load %arg7[%c0_81, %c0_82] : memref<1x32xf32, #tpu.memory_space<vmem>>, vector<1x32xf32>
    %345 = vector.broadcast %344 : vector<1x32xf32> to vector<16x32xf32>
    %346 = arith.addf %343, %345 : vector<16x32xf32>
    %cst_83 = arith.constant dense<0xFF800000> : vector<16xf32>
    %347 = vector.multi_reduction <maximumf>, %346, %cst_83 [1] : vector<16x32xf32> to vector<16xf32>
    %348 = vector.shape_cast %347 : vector<16xf32> to vector<16x1xf32>
    %349 = vector.broadcast %348 : vector<16x1xf32> to vector<16x32xf32>
    %350 = arith.subf %346, %349 : vector<16x32xf32>
    %351 = math.exp %350 : vector<16x32xf32>
    %cst_84 = arith.constant dense<0.000000e+00> : vector<16xf32>
    %352 = vector.multi_reduction <add>, %351, %cst_84 [1] : vector<16x32xf32> to vector<16xf32>
    %353 = vector.shape_cast %352 : vector<16xf32> to vector<16x1xf32>
    %354 = math.log %353 : vector<16x1xf32>
    %355 = vector.broadcast %354 : vector<16x1xf32> to vector<16x32xf32>
    %356 = arith.subf %350, %355 : vector<16x32xf32>
    %c0_85 = arith.constant 0 : index
    %c0_86 = arith.constant 0 : index
    %357 = vector.load %arg14[%c0_85, %c0_86] : memref<16x32xf32, #tpu.memory_space<vmem>>, vector<16x32xf32>
    tpu.vector_store %arg14[%c0_85, %c0_86], %356 {strides = array<i32>} : memref<16x32xf32, #tpu.memory_space<vmem>>, vector<16x32xf32>,
    return
  }
}

</mosaic_0001>

<bundles_post_ra>
// kernel: tpu_custom_call.1
= control target key start
LH: loop header
LB: loop body
LE: loop exit
PB: predicated region body
PF: predicated region fallthrough
CT: control target
= control target key end

     0   :  { %s2374_s0 = inlined_call_operand.vmem [shape: s32[16,1], index: 0, kind: input, shape index: {}]   ;;  %s2375_s1 = inlined_call_operand.vmem [shape: s32[16,1], index: 1, kind: input, shape index: {}]   ;;  %s2376_s2 = inlined_call_operand.vmem [shape: f32[40,16], index: 2, kind: input, shape index: {}]   ;;  %s2377_s3 = inlined_call_operand.vmem [shape: f32[32,16], index: 3, kind: input, shape index: {}]   ;;  %s2378_s4 = inlined_call_operand.vmem [shape: f32[2,2,32], index: 4, kind: input, shape index: {}]   ;;  %s2379_s5 = inlined_call_operand.vmem [shape: f32[2,2,32], index: 5, kind: input, shape index: {}]   ;;  %s2380_s6 = inlined_call_operand.vmem [shape: f32[32,32], index: 6, kind: input, shape index: {}]   ;;  %s2381_s7 = inlined_call_operand.vmem [shape: f32[1,32], index: 7, kind: input, shape index: {}]   ;;  %s2382_s8 = inlined_call_operand.vmem [shape: f32[32,128], index: 8, kind: input, shape index: {}]   ;;  %s2383_s9 = inlined_call_operand.vmem [shape: f32[32,128], index: 9, kind: input, shape index: {}]   ;;  %s2384_s10 = inlined_call_operand.vmem [shape: f32[1,128], index: 10, kind: input, shape index: {}]   ;;  %s2385_s11 = inlined_call_operand.hbm [shape: f32[32,128], index: 11, kind: input, shape index: {}]   ;;  %s2386_s12 = inlined_call_operand.hbm [shape: f32[32,128], index: 12, kind: input, shape index: {}]   ;;  %s2387_s13 = inlined_call_operand.vmem [shape: f32[1,128], index: 13, kind: input, shape index: {}]   ;;  %s2388_s14 = inlined_call_operand.hbm [shape: f32[16,32], index: 14, kind: output, shape index: {0}]   ;;  %s2389_s15 = inlined_call_operand.hbm [shape: f32[2,2,32], index: 15, kind: output, shape index: {1}]   ;;  %s2390_s16 = inlined_call_operand.hbm [shape: f32[2,2,32], index: 16, kind: output, shape index: {2}]  }
   0x1   :  { %2392 = sst [smem:[#allocation15_spill]] %s2374_s0 }
   0x2   :  { %22 = vsyncpa [#allocation3], 0 }
   0x3   :  { %23 = vsyncpa [#allocation6], 0 }
   0x4   :  { %24 = vsyncpa [#allocation4], 0 }
   0x5   :  { %25 = vsyncpa [#allocation9], 0  ;;  %s52_s23 = sshll.u32 %s2385_s11, 4  ;;  %s1903_s24 = smov [#allocation2]   ;;  %s53_s23 = int_to_ptr.hbm [resolvable:$true] %s52_s23 }
   0x6   :  { %s54_s25 = sshll.u32 %s1903_s24, 4  ;;  %s65_s28 = sshll.u32 %s2386_s12, 4  ;;  %s55_s25 = int_to_ptr.vmem [resolvable:$true] %s54_s25  ;;  %s66_s28 = int_to_ptr.hbm [resolvable:$true] %s65_s28 }
   0x7   :  { %s1904_s29 = smov 128   ;;  %s1905_s30 = smov 8  }
   0x8   :  { %60 = dma.hbm_to_vmem [thread:$0]  %s53_s23, 512, %s55_s25, [#allocation3], %s1904_s29, %s1904_s29, %s1905_s30  }
   0x9   :  { %s1906_s0 = smov [#allocation5]  }
   0xa   :  { %s67_s17 = sshll.u32 %s1906_s0, 4  ;;  %s68_s17 = int_to_ptr.vmem [resolvable:$true] %s67_s17 }
   0xb   :  { %73 = dma.hbm_to_vmem [thread:$0]  %s66_s28, 512, %s68_s17, [#allocation6], %s1904_s29, %s1904_s29, %s1905_s30  }
   0xc   :  { %1895 = dma.done.wait [#allocation3], 512  }
   0xd   :  { %1896 = vsyncadd [#allocation3], 4294966784 }
   0xe   :  { %1897 = dma.done.wait [#allocation6], 512  }
   0xf   :  { %1898 = vsyncadd [#allocation6], 4294966784  ;;  %v1907_v0 = vmov 0   ;;  %s2393_s18 = sld [smem:[#allocation15_spill]]  ;;  %v100_v2 = vld [vmem:[%s2375_s1] sm:$0xff]  ;;  %v117_v4 = vld [vmem:[%s2376_s2 + $0x18] sm:$0xff]  ;;  %v84_v15 = vlaneseq }
  0x10   :  { %1634 = vset.pattern.permute.xlu0 %v1907_v0  ;;  %1635 = vset.pattern.permute.xlu1 %v1907_v0  ;;  %v118_v3 = vld [vmem:[%s2376_s2 + $0x20] sm:$0xff]  ;;  %v116_v5 = vld [vmem:[%s2376_s2 + $0x10] sm:$0xff]  ;;  %v115_v6 = vld [vmem:[%s2376_s2 + $0x8] sm:$0xff]  ;;  %vm119_vm0 = vcmask 326656   ;;  %v1908_v19 = vmov 0.0   ;;  %vm153_vm2 = vcmask 261120  }
  0x11   :  { %103 = vperm.xlu1 %1635, %v100_v2   ;;  %137 = vmatpush.msra.mxu0 %v118_v3  ;;  %v101_v8 = vld [vmem:[%s2375_s1 + $0x8] sm:$0xff]  ;;  %v114_v9 = vld [vmem:[%s2376_s2] sm:$0xff]  ;;  %v152_v10 = vld [vmem:[%s2377_s3 + $0x18] sm:$0xff]  ;;  %v85_v16 = vand.u32 127, %v84_v15  ;;  %vm192_vm6 = vcmask 130048   ;;  %s1909_s2 = smov 64  }
  0x12   :  { %v151_v11 = vld [vmem:[%s2377_s3 + $0x10] sm:$0xff]  ;;  %1617 = vmatpush.msra.mxu1 %v152_v10  ;;  %v150_v12 = vld [vmem:[%s2377_s3 + $0x8] sm:$0xff]  ;;  %v149_v13 = vld [vmem:[%s2377_s3] sm:$0xff]  ;;  %s1910_s28 = smov 32   ;;  %s1911_s1 = smov 96  }
  0x13   :  { %138 = vmatpush.msra.mxu0 %v117_v4  ;;  %v184_v14 = vld [vmem:[%s2382_s8 + $0x8] sm:$0xff]  ;;  %v183_v26 = vld [vmem:[%s2382_s8] sm:$0xff]  ;;  %v186_v27 = vld [vmem:[%s2382_s8 + $0x18] sm:$0xff]  ;;  %s1531_s26 = sshll.u32 %s2389_s15, 4  ;;  %s1914_s27 = smov [#allocation10]   ;;  %s1532_s26 = int_to_ptr.hbm [resolvable:$true] %s1531_s26 }
  0x14   :  { %1618 = vmatpush.msra.mxu1 %v151_v11  ;;  %242 = vmatpush.msra.mxu3 %v184_v14  ;;  %v185_v28 = vld [vmem:[%s2382_s8 + $0x10] sm:$0xff]  ;;  %v190_v29 = vld [vmem:[%s2383_s9 + $0x18] sm:$0xff]  ;;  %v188_v31 = vld [vmem:[%s2383_s9 + $0x8] sm:$0xff]  ;;  %s1542_s3 = sshll.u32 %s1914_s27, 4  ;;  %s1544_s15 = sshll.u32 %s2390_s16, 4  ;;  %s1543_s3 = int_to_ptr.vmem [resolvable:$true] %s1542_s3  ;;  %s1545_s15 = int_to_ptr.hbm [resolvable:$true] %s1544_s15 }
  0x15   :  { %v86_v1 = vld [vmem:[%s2393_s18] sm:$0xff]  ;;  %v87_v7 = vld [vmem:[%s2393_s18 + $0x8] sm:$0xff]  ;;  %139 = vmatpush.msra.mxu0 %v116_v5  ;;  %213 = vmatpush.msra.mxu2 %v186_v27  ;;  %v189_v30 = vld [vmem:[%s2383_s9 + $0x10] sm:$0xff]  ;;  %s1915_s17 = smov [#allocation7]  }
  0x16   :  { %89 = vperm.xlu0 %1634, %v86_v1   ;;  %1619 = vmatpush.msra.mxu1 %v150_v12  ;;  %v187_v32 = vld [vmem:[%s2383_s9] sm:$0xff]  ;;  %s1516_s11 = sshll.u32 %s1915_s17, 4  ;;  %s1517_s11 = int_to_ptr.vmem [resolvable:$true] %s1516_s11 }
  0x17   :  { %140 = vmatpush.msra.mxu0 %v115_v6  ;;  %243 = vmatpush.msra.mxu3 %v183_v26  ;;  %v256_v37 = vld [vmem:[%s2378_s4] sm:$0x3] }
  0x18   :  { %1620 = vmatpush.msra.mxu1 %v149_v13  ;;  %214 = vmatpush.msra.mxu2 %v185_v28  ;;  %v1636_v42 = vld [vmem:[%s2384_s10] ss:$0 sm:$0xff] }
  0x19   :  { %106 = vperm.xlu1 %1635, %v101_v8   ;;  %141 = vmatpush.msra.mxu0 %v114_v9  ;;  %v257_v50 = vld [vmem:[%s2379_s5] sm:$0x3] }
  0x1a   :  { %273 = vmatpush.msrb.mxu2 %v190_v29  ;;  %340 = vmatpush.msrb.mxu3 %v190_v29 }
  0x1b   :  { %172 = vmatpush.msrb.mxu0 %v152_v10  ;;  %410 = vmatpush.msrb.mxu1 %v190_v29 }
  0x1c   :  { %274 = vmatpush.msrb.mxu2 %v189_v30  ;;  %341 = vmatpush.msrb.mxu3 %v189_v30 }
  0x1d   :  { %173 = vmatpush.msrb.mxu0 %v151_v11  ;;  %411 = vmatpush.msrb.mxu1 %v189_v30 }
  0x1e   :  { %92 = vperm.xlu0 %1634, %v87_v7   ;;  %275 = vmatpush.msrb.mxu2 %v188_v31 }
  0x1f   :  { %174 = vmatpush.msrb.mxu0 %v150_v12  ;;  %342 = vmatpush.msrb.mxu3 %v188_v31 }
  0x20   :  { %412 = vmatpush.msrb.mxu1 %v188_v31  ;;  %276 = vmatpush.msrb.mxu2 %v187_v32 }
  0x21   :  { %175 = vmatpush.msrb.mxu0 %v149_v13  ;;  %343 = vmatpush.msrb.mxu3 %v187_v32 }
  0x22   :  { %413 = vmatpush.msrb.mxu1 %v187_v32 }
  0x83   :  { %v104_v18 = vpop.permute.xlu1 %103 }
  0x84   :  { %vm108_vm5 = vcmp.eq.s32.totalorder %v85_v16, %v104_v18 }
  0x85   :  { %v1569_v25 = vsel %vm108_vm5, 1.0, %v1908_v19  ;;  %vm810_vm5 = vcmask 1043456  }
  0x88   :  { %v90_v17 = vpop.permute.xlu0 %89 }
  0x89   :  { %vm94_vm1 = vcmp.eq.s32.totalorder %v85_v16, %v90_v17 }
  0x8a   :  { %v1567_v20 = vsel %vm94_vm1, 1.0, %v1908_v19 }
  0x8b   :  { %1571 = vmatmul.msk.f32.vlgmr.msra.gmra.mxu0 %vm119_vm0, %v1567_v20  ;;  %v107_v22 = vpop.permute.xlu1 %106 }
  0x8c   :  { %vm109_vm4 = vcmp.eq.s32.totalorder %v85_v16, %v107_v22  ;;  %480 = vmatpush.msra.mxu0 %v190_v29 }
  0x8d   :  { %v1570_v24 = vsel %vm109_vm4, 1.0, %v1908_v19  ;;  %vm808_vm4 = vcmask 1041408  }
  0x8e   :  { %1574 = vmatmul.msk.f32.vlgmr.msra.gmra.mxu1 %vm153_vm2, %v1570_v24  ;;  %481 = vmatpush.msra.mxu0 %v189_v30 }
  0x8f   :  { %686 = vmatpush.msra.mxu1 %v190_v29 }
  0x90   :  { %v93_v21 = vpop.permute.xlu0 %92  ;;  %482 = vmatpush.msra.mxu0 %v188_v31 }
  0x91   :  { %vm95_vm3 = vcmp.eq.s32.totalorder %v85_v16, %v93_v21  ;;  %687 = vmatpush.msra.mxu1 %v189_v30 }
  0x92   :  { %v1568_v23 = vsel %vm95_vm3, 1.0, %v1908_v19  ;;  %483 = vmatpush.msra.mxu0 %v187_v32 }
  0x93   :  { %1572 = vmatmul.msk.f32.gmra.mxu0 %vm119_vm0, %v1568_v23  ;;  %688 = vmatpush.msra.mxu1 %v188_v31 }
  0x95   :  { %689 = vmatpush.msra.mxu1 %v187_v32 }
  0x9b   :  { %1573 = vmatmul.msk.f32.vlgmr.msrb.gmra.mxu0 %vm153_vm2, %v1569_v25 }
  0x9c   :  { %756 = vmatpush.msrb.mxu0 %v190_v29 }
  0x9e   :  { %757 = vmatpush.msrb.mxu0 %v189_v30 }
  0xa0   :  { %758 = vmatpush.msrb.mxu0 %v188_v31 }
  0xa2   :  { %759 = vmatpush.msrb.mxu0 %v187_v32 }
 0x108   :  { %v143_v33 = vpop.f32.mrf.mxu0 }
 0x109   :  { %1577 = vmatmul.msk.f32.vlgmr.msra.gmra.mxu3 %vm192_vm6, %v143_v33 }
 0x10a   :  { %616 = vmatpush.msra.mxu3 %v190_v29 }
 0x10b   :  { %v180_v36 = vpop.f32.mrf.mxu1 }
 0x10c   :  { %617 = vmatpush.msra.mxu3 %v189_v30 }
 0x10e   :  { %618 = vmatpush.msra.mxu3 %v188_v31 }
 0x110   :  { %v146_v34 = vpop.f32.mrf.mxu0  ;;  %619 = vmatpush.msra.mxu3 %v187_v32 }
 0x111   :  { %1578 = vmatmul.msk.f32.gmra.mxu3 %vm192_vm6, %v146_v34 }
 0x118   :  { %v177_v35 = vpop.f32.mrf.mxu0 }
 0x119   :  { %1575 = vmatmul.msk.f32.vlgmr.msra.gmra.mxu2 %vm192_vm6, %v177_v35 }
 0x11a   :  { %550 = vmatpush.msra.mxu2 %v190_v29 }
 0x11c   :  { %551 = vmatpush.msra.mxu2 %v189_v30 }
 0x11e   :  { %552 = vmatpush.msra.mxu2 %v188_v31 }
 0x120   :  { %553 = vmatpush.msra.mxu2 %v187_v32 }
 0x121   :  { %1576 = vmatmul.msk.f32.gmra.mxu2 %vm192_vm6, %v180_v36 }
 0x129   :  { %1579 = vmatmul.msk.f32.vlgmr.msrb.gmra.mxu2 %vm153_vm2, %v256_v37 }
 0x18c   :  { %v245_v38 = vpop.f32.mrf.mxu3 }
 0x194   :  { %v248_v40 = vpop.f32.mrf.mxu3 }
 0x19c   :  { %v216_v39 = vpop.f32.mrf.mxu2 }
 0x19d   :  { %v246_v44 = vadd.f32 %v245_v38, %v216_v39 }
 0x19f   :  { %v2091_v46 = vadd.f32 %v1636_v42, %v246_v44 }
 0x1a4   :  { %v219_v41 = vpop.f32.mrf.mxu2 }
 0x1a5   :  { %v249_v43 = vadd.f32 %v248_v40, %v219_v41 }
 0x1a7   :  { %v2089_v45 = vadd.f32 %v1636_v42, %v249_v43 }
 0x1ac   :  { %v278_v47 = vpop.f32.mrf.mxu2 }
 0x1ad   :  { %v281_v48 = vadd.f32 %v278_v47, %v2091_v46 }
 0x1af   :  { %1639 = vtanh.f32 %v281_v48  ;;  %v1580_v51 = vmul.f32 -1.442695, %v281_v48 }
 0x1b1   :  { %1641 = vpow2.f32 %v1580_v51 }
 0x1b5   :  { %v1640_v49 = vpop.eup %1639 }
 0x1b6   :  { %308 = vrot.lane.b32.xlu2 %v1640_v49, %s1909_s2 }
 0x1b7   :  { %v1642_v52 = vpop.eup %1641 }
 0x1b8   :  { %v285_v53 = vadd.f32 1.0, %v1642_v52 }
 0x1ba   :  { %1643 = vrcp.f32 %v285_v53  ;;  %v297_v59 = vand.u32 2147483648, %v285_v53  ;;  %vm291_vm8 = vweird.f32 %v285_v53  ;;  %v295_v60 = vand.u32 2147483647, %v285_v53 }
 0x1bc   :  { %v298_v62 = vor.u32 1.1754944e-38, %v297_v59  ;;  %vm296_vm10 = vcmp.eq.f32.partialorder %v295_v60, 8.507059e+37 }
 0x1be   :  { %303 = vrot.lane.b32.xlu2 %v257_v50, %s1910_s28 }
 0x1c0   :  { %v1644_v54 = vpop.eup %1643 }
 0x1c1   :  { %v287_v55 = vmul.f32 %v1644_v54, %v285_v53  ;;  %vm292_vm7 = vweird.f32 %v1644_v54 }
 0x1c2   :  { %vm293_vm9 = vmor %vm291_vm8, %vm292_vm7 }
 0x1c3   :  { %v288_v56 = vsub.f32 1.0, %v287_v55 }
 0x1c5   :  { %v289_v57 = vmul.f32 %v1644_v54, %v288_v56 }
 0x1c7   :  { %v290_v58 = vadd.f32 %v1644_v54, %v289_v57 }
 0x1c9   :  { %v294_v61 = vsel %vm293_vm9, %v1644_v54, %v290_v58 }
 0x1ca   :  { %v299_v0 = vsel %vm296_vm10, %v298_v62, %v294_v61  ;;  %vm812_vm10 = vcmask 1045504  }
 0x210   :  { %v309_v63 = vpop.permute.xlu2 %308 }
 0x211   :  { %v311_v1 = vmul.f32 %v309_v63, %v299_v0 }
 0x213   :  { %313 = vrot.lane.b32.xlu0 %v311_v1, %s1910_s28 }
 0x218   :  { %v304_v2 = vpop.permute.xlu2 %303 }
 0x219   :  { %v306_v3 = vmul.f32 %v304_v2, %v299_v0 }
 0x285   :  { %v314_v4 = vpop.permute.xlu0 %313 }
 0x286   :  { %v316_v5 = vadd.f32 %v314_v4, %v306_v3 }
 0x288   :  { %1645 = vtanh.f32 %v316_v5  ;;  %v373_v29 = vrot.slane %v316_v5, 6 }
 0x28e   :  { %v1646_v6 = vpop.eup %1645 }
 0x28f   :  { %319 = vrot.lane.b32.xlu1 %v1646_v6, %s1909_s2 }
 0x301   :  { %v320_v7 = vpop.permute.xlu1 %319 }
 0x302   :  { %v2101_v8 = vmul.f32 %v320_v7, %v299_v0 }
 0x304   :  { %324 = vrot.lane.b32.xlu2 %v2101_v8, %s1910_s28 }
 0x35e   :  { %v325_v9 = vpop.permute.xlu2 %324 }
 0x35f   :  { %1581 = vmatmul.msk.f32.vlgmr.msrb.gmra.mxu3 %vm153_vm2, %v325_v9 }
 0x3e2   :  { %v345_v10 = vpop.f32.mrf.mxu3 }
 0x3e3   :  { %v349_v11 = vrot.slane %v345_v10, 6 }
 0x3e5   :  { %v351_v12 = vadd.f32 %v349_v11, %v2091_v46 }
 0x3e7   :  { %1647 = vtanh.f32 %v351_v12  ;;  %v1582_v14 = vmul.f32 -1.442695, %v351_v12 }
 0x3e9   :  { %1649 = vpow2.f32 %v1582_v14 }
 0x3ed   :  { %v1648_v13 = vpop.eup %1647 }
 0x3ee   :  { %377 = vrot.lane.b32.xlu0 %v1648_v13, %s1909_s2 }
 0x3ef   :  { %v1650_v15 = vpop.eup %1649 }
 0x3f0   :  { %v355_v16 = vadd.f32 1.0, %v1650_v15 }
 0x3f2   :  { %1651 = vrcp.f32 %v355_v16  ;;  %v367_v22 = vand.u32 2147483648, %v355_v16  ;;  %vm361_vm12 = vweird.f32 %v355_v16  ;;  %v365_v23 = vand.u32 2147483647, %v355_v16 }
 0x3f4   :  { %v368_v25 = vor.u32 1.1754944e-38, %v367_v22  ;;  %vm366_vm14 = vcmp.eq.f32.partialorder %v365_v23, 8.507059e+37 }
 0x3f8   :  { %v1652_v17 = vpop.eup %1651 }
 0x3f9   :  { %v357_v18 = vmul.f32 %v1652_v17, %v355_v16  ;;  %vm362_vm11 = vweird.f32 %v1652_v17 }
 0x3fa   :  { %vm363_vm13 = vmor %vm361_vm12, %vm362_vm11 }
 0x3fb   :  { %v358_v19 = vsub.f32 1.0, %v357_v18 }
 0x3fd   :  { %v359_v20 = vmul.f32 %v1652_v17, %v358_v19 }
 0x3ff   :  { %v360_v21 = vadd.f32 %v1652_v17, %v359_v20 }
 0x401   :  { %v364_v24 = vsel %vm363_vm13, %v1652_v17, %v360_v21 }
 0x402   :  { %v369_v27 = vsel %vm366_vm14, %v368_v25, %v364_v24 }
 0x403   :  { %v375_v30 = vmul.f32 %v373_v29, %v369_v27 }
 0x460   :  { %v378_v26 = vpop.permute.xlu0 %377 }
 0x461   :  { %v380_v28 = vmul.f32 %v378_v26, %v369_v27 }
 0x463   :  { %382 = vrot.lane.b32.xlu1 %v380_v28, %s1910_s28 }
 0x4d5   :  { %v383_v31 = vpop.permute.xlu1 %382 }
 0x4d6   :  { %v385_v32 = vadd.f32 %v383_v31, %v375_v30 }
 0x4d8   :  { %1653 = vtanh.f32 %v385_v32  ;;  %v443_v59 = vrot.slane %v385_v32, 6 }
 0x4de   :  { %v1654_v33 = vpop.eup %1653 }
 0x4df   :  { %388 = vrot.lane.b32.xlu2 %v1654_v33, %s1909_s2 }
 0x539   :  { %v389_v34 = vpop.permute.xlu2 %388 }
 0x53a   :  { %v391_v35 = vmul.f32 %v389_v34, %v369_v27 }
 0x53c   :  { %v393_v36 = vrot.slane %v391_v35, 2  ;;  %v809_v2 = vsel %vm808_vm4, %v2101_v8, %v391_v35 }
 0x53e   :  { %394 = vrot.lane.b32.xlu0 %v393_v36, %s1910_s28 }
 0x5b0   :  { %v395_v37 = vpop.permute.xlu0 %394 }
 0x5b1   :  { %1583 = vmatmul.msk.f32.vlgmr.msrb.gmra.mxu1 %vm153_vm2, %v395_v37 }
 0x62e   :  { %v415_v38 = vpop.f32.mrf.mxu1 }
 0x62f   :  { %v419_v39 = vrot.slane %v415_v38, 4 }
 0x631   :  { %v421_v40 = vadd.f32 %v419_v39, %v2091_v46 }
 0x633   :  { %1655 = vtanh.f32 %v421_v40  ;;  %v1584_v42 = vmul.f32 -1.442695, %v421_v40 }
 0x635   :  { %1657 = vpow2.f32 %v1584_v42 }
 0x639   :  { %v1656_v41 = vpop.eup %1655 }
 0x63a   :  { %447 = vrot.lane.b32.xlu1 %v1656_v41, %s1909_s2 }
 0x63b   :  { %v1658_v43 = vpop.eup %1657 }
 0x63c   :  { %v425_v44 = vadd.f32 1.0, %v1658_v43 }
 0x63e   :  { %1659 = vrcp.f32 %v425_v44  ;;  %v437_v52 = vand.u32 2147483648, %v425_v44  ;;  %vm431_vm0 = vweird.f32 %v425_v44  ;;  %v435_v53 = vand.u32 2147483647, %v425_v44 }
 0x640   :  { %v438_v55 = vor.u32 1.1754944e-38, %v437_v52  ;;  %vm436_vm3 = vcmp.eq.f32.partialorder %v435_v53, 8.507059e+37 }
 0x644   :  { %v1660_v47 = vpop.eup %1659 }
 0x645   :  { %v427_v48 = vmul.f32 %v1660_v47, %v425_v44  ;;  %vm432_vm15 = vweird.f32 %v1660_v47 }
 0x646   :  { %vm433_vm1 = vmor %vm431_vm0, %vm432_vm15 }
 0x647   :  { %v428_v49 = vsub.f32 1.0, %v427_v48 }
 0x649   :  { %v429_v50 = vmul.f32 %v1660_v47, %v428_v49 }
 0x64b   :  { %v430_v51 = vadd.f32 %v1660_v47, %v429_v50 }
 0x64d   :  { %v434_v54 = vsel %vm433_vm1, %v1660_v47, %v430_v51 }
 0x64e   :  { %v439_v57 = vsel %vm436_vm3, %v438_v55, %v434_v54  ;;  %v831_v54 = vld [vmem:[#allocation2 + $0x18] sm:$0xff]  ;;  %v830_v55 = vld [vmem:[#allocation2 + $0x10] sm:$0xff] }
 0x64f   :  { %v445_v60 = vmul.f32 %v443_v59, %v439_v57  ;;  %862 = vmatpush.msrb.mxu2 %v831_v54 }
 0x651   :  { %863 = vmatpush.msrb.mxu2 %v830_v55 }
 0x6ac   :  { %v448_v56 = vpop.permute.xlu1 %447 }
 0x6ad   :  { %v450_v58 = vmul.f32 %v448_v56, %v439_v57  ;;  %v829_v56 = vld [vmem:[#allocation2 + $0x8] sm:$0xff] }
 0x6ae   :  { %864 = vmatpush.msrb.mxu2 %v829_v56 }
 0x6af   :  { %452 = vrot.lane.b32.xlu2 %v450_v58, %s1910_s28 }
 0x709   :  { %v453_v61 = vpop.permute.xlu2 %452 }
 0x70a   :  { %v455_v62 = vadd.f32 %v453_v61, %v445_v60 }
 0x70c   :  { %1661 = vtanh.f32 %v455_v62  ;;  %v513_v24 = vrot.slane %v455_v62, 6 }
 0x712   :  { %v1662_v63 = vpop.eup %1661 }
 0x713   :  { %458 = vrot.lane.b32.xlu0 %v1662_v63, %s1909_s2 }
 0x785   :  { %v459_v0 = vpop.permute.xlu0 %458 }
 0x786   :  { %v461_v1 = vmul.f32 %v459_v0, %v439_v57  ;;  %v828_v57 = vld [vmem:[#allocation2] sm:$0xff] }
 0x787   :  { %865 = vmatpush.msrb.mxu2 %v828_v57 }
 0x788   :  { %v463_v3 = vrot.slane %v461_v1, 4  ;;  %v811_v4 = vsel %vm810_vm5, %v809_v2, %v461_v1  ;;  %v2141_v2 = vld [vmem:[#allocation5 + $0x18] sm:$0xff] }
 0x789   :  { %892 = vmatpush.msrb.mxu3 %v2141_v2  ;;  %959 = vmatpush.msrb.mxu1 %v2141_v2 }
 0x78a   :  { %464 = vrot.lane.b32.xlu1 %v463_v3, %s1910_s28  ;;  %v2143_v3 = vld [vmem:[#allocation5 + $0x10] sm:$0xff] }
 0x78b   :  { %893 = vmatpush.msrb.mxu3 %v2143_v3  ;;  %960 = vmatpush.msrb.mxu1 %v2143_v3 }
 0x7fc   :  { %v465_v5 = vpop.permute.xlu1 %464 }
 0x7fd   :  { %1585 = vmatmul.msk.f32.vlgmr.msra.gmra.mxu0 %vm153_vm2, %v465_v5  ;;  %v2153_v5 = vld [vmem:[#allocation5] sm:$0xff] }
 0x7fe   :  { %1029 = vmatpush.msra.mxu0 %v2141_v2 }
 0x800   :  { %1030 = vmatpush.msra.mxu0 %v2143_v3 }
 0x87a   :  { %v485_v6 = vpop.f32.mrf.mxu0 }
 0x87b   :  { %v489_v7 = vrot.slane %v485_v6, 2 }
 0x87d   :  { %v491_v9 = vadd.f32 %v489_v7, %v2091_v46  ;;  %v1597_v7 = vld [vmem:[%s2378_s4 + $0x2] sm:$0x3] }
 0x87f   :  { %1663 = vtanh.f32 %v491_v9  ;;  %v1586_v11 = vmul.f32 -1.442695, %v491_v9 }
 0x881   :  { %1665 = vpow2.f32 %v1586_v11  ;;  %v2181_v11 = vld [vmem:[%s2387_s13] ss:$0 sm:$0xff] }
 0x885   :  { %v1664_v10 = vpop.eup %1663 }
 0x886   :  { %517 = vrot.lane.b32.xlu2 %v1664_v10, %s1909_s2 }
 0x887   :  { %v1666_v12 = vpop.eup %1665 }
 0x888   :  { %v495_v8 = vadd.f32 1.0, %v1666_v12 }
 0x88a   :  { %1667 = vrcp.f32 %v495_v8  ;;  %v507_v18 = vand.u32 2147483648, %v495_v8  ;;  %vm501_vm7 = vweird.f32 %v495_v8  ;;  %v505_v19 = vand.u32 2147483647, %v495_v8 }
 0x88c   :  { %v508_v20 = vor.u32 1.1754944e-38, %v507_v18  ;;  %vm506_vm9 = vcmp.eq.f32.partialorder %v505_v19, 8.507059e+37  ;;  %v1598_v18 = vld [vmem:[%s2379_s5 + $0x2] sm:$0x3]  ;;  %s1518_s5 = sshll.u32 %s2388_s14, 4  ;;  %s1519_s5 = int_to_ptr.hbm [resolvable:$true] %s1518_s5 }
 0x890   :  { %v1668_v13 = vpop.eup %1667 }
 0x891   :  { %v497_v14 = vmul.f32 %v1668_v13, %v495_v8  ;;  %vm502_vm6 = vweird.f32 %v1668_v13 }
 0x892   :  { %vm503_vm8 = vmor %vm501_vm7, %vm502_vm6 }
 0x893   :  { %v498_v15 = vsub.f32 1.0, %v497_v14 }
 0x895   :  { %v499_v16 = vmul.f32 %v1668_v13, %v498_v15 }
 0x897   :  { %v500_v17 = vadd.f32 %v1668_v13, %v499_v16 }
 0x899   :  { %v504_v46 = vsel %vm503_vm8, %v1668_v13, %v500_v17 }
 0x89a   :  { %v509_v22 = vsel %vm506_vm9, %v508_v20, %v504_v46 }
 0x89b   :  { %v515_v25 = vmul.f32 %v513_v24, %v509_v22 }
 0x8e0   :  { %v518_v21 = vpop.permute.xlu2 %517 }
 0x8e1   :  { %v520_v23 = vmul.f32 %v518_v21, %v509_v22 }
 0x8e3   :  { %522 = vrot.lane.b32.xlu0 %v520_v23, %s1910_s28 }
 0x955   :  { %v523_v26 = vpop.permute.xlu0 %522 }
 0x956   :  { %v525_v27 = vadd.f32 %v523_v26, %v515_v25 }
 0x958   :  { %1669 = vtanh.f32 %v525_v27  ;;  %v580_v58 = vrot.slane %v525_v27, 6 }
 0x95e   :  { %v1670_v28 = vpop.eup %1669 }
 0x95f   :  { %528 = vrot.lane.b32.xlu1 %v1670_v28, %s1909_s2 }
 0x9d1   :  { %v529_v29 = vpop.permute.xlu1 %528 }
 0x9d2   :  { %v531_v30 = vmul.f32 %v529_v29, %v509_v22 }
 0x9d4   :  { %v533_v31 = vrot.slane %v531_v30, 6  ;;  %v813_v32 = vsel %vm812_vm10, %v811_v4, %v531_v30  ;;  %v2147_v4 = vld [vmem:[#allocation5 + $0x8] sm:$0xff] }
 0x9d5   :  { %894 = vmatpush.msrb.mxu3 %v2147_v4  ;;  %961 = vmatpush.msrb.mxu1 %v2147_v4 }
 0x9d6   :  { %534 = vrot.lane.b32.xlu2 %v533_v31, %s1910_s28  ;;  %1031 = vmatpush.msra.mxu0 %v2147_v4 }
 0x9d7   :  { %895 = vmatpush.msrb.mxu3 %v2153_v5  ;;  %962 = vmatpush.msrb.mxu1 %v2153_v5 }
 0x9d8   :  { %1032 = vmatpush.msra.mxu0 %v2153_v5 }
 0xa30   :  { %v535_v33 = vpop.permute.xlu2 %534 }
 0xa31   :  { %1587 = vmatmul.msk.f32.vlgmr.msra.gmra.mxu2 %vm153_vm2, %v535_v33 }
 0xa32   :  { %1305 = vmatpush.msra.mxu2 %v2141_v2 }
 0xa34   :  { %1306 = vmatpush.msra.mxu2 %v2143_v3 }
 0xa36   :  { %1307 = vmatpush.msra.mxu2 %v2147_v4 }
 0xa38   :  { %1308 = vmatpush.msra.mxu2 %v2153_v5 }
 0xab4   :  { %v555_v34 = vpop.f32.mrf.mxu2 }
 0xab5   :  { %v558_v35 = vadd.f32 %v555_v34, %v2089_v45 }
 0xab7   :  { %1671 = vtanh.f32 %v558_v35  ;;  %v1588_v37 = vmul.f32 -1.442695, %v558_v35 }
 0xab9   :  { %1673 = vpow2.f32 %v1588_v37 }
 0xabd   :  { %v1672_v36 = vpop.eup %1671 }
 0xabe   :  { %584 = vrot.lane.b32.xlu0 %v1672_v36, %s1909_s2 }
 0xabf   :  { %v1674_v38 = vpop.eup %1673 }
 0xac0   :  { %v562_v39 = vadd.f32 1.0, %v1674_v38 }
 0xac2   :  { %1675 = vrcp.f32 %v562_v39  ;;  %v574_v47 = vand.u32 2147483648, %v562_v39  ;;  %vm568_vm12 = vweird.f32 %v562_v39  ;;  %v572_v48 = vand.u32 2147483647, %v562_v39 }
 0xac4   :  { %v575_v50 = vor.u32 1.1754944e-38, %v574_v47  ;;  %vm573_vm14 = vcmp.eq.f32.partialorder %v572_v48, 8.507059e+37 }
 0xac8   :  { %v1676_v40 = vpop.eup %1675 }
 0xac9   :  { %v564_v41 = vmul.f32 %v1676_v40, %v562_v39  ;;  %vm569_vm11 = vweird.f32 %v1676_v40 }
 0xaca   :  { %vm570_vm13 = vmor %vm568_vm12, %vm569_vm11 }
 0xacb   :  { %v565_v42 = vsub.f32 1.0, %v564_v41 }
 0xacd   :  { %v566_v43 = vmul.f32 %v1676_v40, %v565_v42 }
 0xacf   :  { %v567_v44 = vadd.f32 %v1676_v40, %v566_v43 }
 0xad1   :  { %v571_v49 = vsel %vm570_vm13, %v1676_v40, %v567_v44 }
 0xad2   :  { %v576_v52 = vsel %vm573_vm14, %v575_v50, %v571_v49 }
 0xad3   :  { %v582_v59 = vmul.f32 %v580_v58, %v576_v52 }
 0xb30   :  { %v585_v51 = vpop.permute.xlu0 %584 }
 0xb31   :  { %v587_v53 = vmul.f32 %v585_v51, %v576_v52 }
 0xb33   :  { %589 = vrot.lane.b32.xlu1 %v587_v53, %s1910_s28 }
 0xb3b   :  { %842 = vrot.lane.b32.xlu1 %v813_v32, %s1910_s28 }
 0xba5   :  { %v590_v60 = vpop.permute.xlu1 %589 }
 0xba6   :  { %v2132_v61 = vadd.f32 %v590_v60, %v582_v59 }
 0xba8   :  { %1677 = vtanh.f32 %v2132_v61  ;;  %v649_v50 = vrot.slane %v2132_v61, 6 }
 0xbad   :  { %v843_v62 = vpop.permute.xlu1 %842 }
 0xbae   :  { %v1678_v63 = vpop.eup %1677  ;;  %1595 = vmatmul.msk.f32.vlgmr.msrb.gmra.mxu2 %vm153_vm2, %v843_v62 }
 0xbaf   :  { %595 = vrot.lane.b32.xlu2 %v1678_v63, %s1909_s2 }
 0xc09   :  { %v596_v0 = vpop.permute.xlu2 %595 }
 0xc0a   :  { %v2137_v1 = vmul.f32 %v596_v0, %v576_v52 }
 0xc0c   :  { %600 = vrot.lane.b32.xlu0 %v2137_v1, %s1910_s28 }
 0xc31   :  { %v867_v8 = vpop.f32.mrf.mxu2 }
 0xc32   :  { %v2185_v13 = vadd.f32 %v2181_v11, %v867_v8 }
 0xc7e   :  { %v601_v6 = vpop.permute.xlu0 %600 }
 0xc7f   :  { %1589 = vmatmul.msk.f32.vlgmr.msra.gmra.mxu3 %vm153_vm2, %v601_v6 }
 0xc80   :  { %1099 = vmatpush.msra.mxu3 %v2141_v2 }
 0xc82   :  { %1100 = vmatpush.msra.mxu3 %v2143_v3 }
 0xc84   :  { %1101 = vmatpush.msra.mxu3 %v2147_v4 }
 0xc86   :  { %1102 = vmatpush.msra.mxu3 %v2153_v5 }
 0xc87   :  { %1599 = vmatmul.msk.f32.vlgmr.msrb.gmra.mxu3 %vm153_vm2, %v1597_v7 }
 0xc88   :  { %1375 = vmatpush.msrb.mxu3 %v2141_v2 }
 0xc8a   :  { %1376 = vmatpush.msrb.mxu3 %v2143_v3 }
 0xc8c   :  { %1377 = vmatpush.msrb.mxu3 %v2147_v4 }
 0xc8e   :  { %1378 = vmatpush.msrb.mxu3 %v2153_v5 }
 0xd02   :  { %v621_v9 = vpop.f32.mrf.mxu3 }
 0xd03   :  { %v625_v10 = vrot.slane %v621_v9, 6 }
 0xd05   :  { %v627_v12 = vadd.f32 %v625_v10, %v2089_v45 }
 0xd07   :  { %1679 = vtanh.f32 %v627_v12  ;;  %v1590_v19 = vmul.f32 -1.442695, %v627_v12 }
 0xd0a   :  { %v897_v14 = vpop.f32.mrf.mxu3 }
 0xd0b   :  { %v900_v15 = vadd.f32 %v897_v14, %v2185_v13 }
 0xd0d   :  { %v1680_v16 = vpop.eup %1679  ;;  %1681 = vtanh.f32 %v900_v15  ;;  %v1600_v23 = vmul.f32 -1.442695, %v900_v15 }
 0xd0e   :  { %653 = vrot.lane.b32.xlu2 %v1680_v16, %s1909_s2  ;;  %1683 = vpow2.f32 %v1590_v19 }
 0xd13   :  { %v1682_v17 = vpop.eup %1681 }
 0xd14   :  { %927 = vrot.lane.b32.xlu0 %v1682_v17, %s1909_s2  ;;  %v1684_v46 = vpop.eup %1683 }
 0xd15   :  { %v631_v20 = vadd.f32 1.0, %v1684_v46 }
 0xd16   :  { %922 = vrot.lane.b32.xlu2 %v1598_v18, %s1910_s28 }
 0xd17   :  { %1685 = vrcp.f32 %v631_v20  ;;  %v643_v27 = vand.u32 2147483648, %v631_v20  ;;  %vm637_vm0 = vweird.f32 %v631_v20  ;;  %v641_v29 = vand.u32 2147483647, %v631_v20 }
 0xd18   :  { %1687 = vpow2.f32 %v1600_v23 }
 0xd19   :  { %v644_v32 = vor.u32 1.1754944e-38, %v643_v27  ;;  %vm642_vm3 = vcmp.eq.f32.partialorder %v641_v29, 8.507059e+37 }
 0xd1d   :  { %v1686_v21 = vpop.eup %1685 }
 0xd1e   :  { %v633_v22 = vmul.f32 %v1686_v21, %v631_v20  ;;  %vm638_vm15 = vweird.f32 %v1686_v21  ;;  %v1688_v28 = vpop.eup %1687 }
 0xd1f   :  { %vm639_vm1 = vmor %vm637_vm0, %vm638_vm15  ;;  %v904_v31 = vadd.f32 1.0, %v1688_v28 }
 0xd20   :  { %v634_v24 = vsub.f32 1.0, %v633_v22 }
 0xd21   :  { %1689 = vrcp.f32 %v904_v31  ;;  %v916_v41 = vand.u32 2147483648, %v904_v31  ;;  %vm910_vm7 = vweird.f32 %v904_v31  ;;  %v914_v42 = vand.u32 2147483647, %v904_v31 }
 0xd22   :  { %v635_v25 = vmul.f32 %v1686_v21, %v634_v24 }
 0xd23   :  { %v917_v44 = vor.u32 1.1754944e-38, %v916_v41  ;;  %vm915_vm9 = vcmp.eq.f32.partialorder %v914_v42, 8.507059e+37 }
 0xd24   :  { %v636_v26 = vadd.f32 %v1686_v21, %v635_v25 }
 0xd26   :  { %v640_v30 = vsel %vm639_vm1, %v1686_v21, %v636_v26 }
 0xd27   :  { %v645_v34 = vsel %vm642_vm3, %v644_v32, %v640_v30  ;;  %v1690_v36 = vpop.eup %1689 }
 0xd28   :  { %v906_v37 = vmul.f32 %v1690_v36, %v904_v31  ;;  %vm911_vm6 = vweird.f32 %v1690_v36  ;;  %v651_v51 = vmul.f32 %v649_v50, %v645_v34 }
 0xd29   :  { %vm912_vm8 = vmor %vm910_vm7, %vm911_vm6 }
 0xd2a   :  { %v907_v38 = vsub.f32 1.0, %v906_v37 }
 0xd2c   :  { %v908_v39 = vmul.f32 %v1690_v36, %v907_v38 }
 0xd2e   :  { %v909_v40 = vadd.f32 %v1690_v36, %v908_v39 }
 0xd30   :  { %v913_v43 = vsel %vm912_vm8, %v1690_v36, %v909_v40 }
 0xd31   :  { %v918_v47 = vsel %vm915_vm9, %v917_v44, %v913_v43 }
 0xd68   :  { %v654_v33 = vpop.permute.xlu2 %653 }
 0xd69   :  { %v656_v35 = vmul.f32 %v654_v33, %v645_v34 }
 0xd6b   :  { %658 = vrot.lane.b32.xlu1 %v656_v35, %s1910_s28 }
 0xd70   :  { %v923_v55 = vpop.permute.xlu2 %922 }
 0xd71   :  { %v925_v56 = vmul.f32 %v923_v55, %v918_v47 }
 0xd86   :  { %v928_v48 = vpop.permute.xlu0 %927 }
 0xd87   :  { %v930_v49 = vmul.f32 %v928_v48, %v918_v47 }
 0xd89   :  { %932 = vrot.lane.b32.xlu0 %v930_v49, %s1910_s28 }
 0xddd   :  { %v659_v52 = vpop.permute.xlu1 %658 }
 0xdde   :  { %v2197_v53 = vadd.f32 %v659_v52, %v651_v51 }
 0xde0   :  { %1691 = vtanh.f32 %v2197_v53  ;;  %v719_v49 = vrot.slane %v2197_v53, 6 }
 0xde6   :  { %v1692_v54 = vpop.eup %1691 }
 0xde7   :  { %664 = vrot.lane.b32.xlu1 %v1692_v54, %s1909_s2 }
 0xdfb   :  { %v933_v57 = vpop.permute.xlu0 %932 }
 0xdfc   :  { %v2201_v58 = vadd.f32 %v933_v57, %v925_v56 }
 0xdfe   :  { %1693 = vtanh.f32 %v2201_v58  ;;  %v992_v54 = vrot.slane %v2201_v58, 6 }
 0xe04   :  { %v1694_v59 = vpop.eup %1693 }
 0xe05   :  { %938 = vrot.lane.b32.xlu2 %v1694_v59, %s1909_s2 }
 0xe59   :  { %v665_v60 = vpop.permute.xlu1 %664 }
 0xe5a   :  { %v2205_v61 = vmul.f32 %v665_v60, %v645_v34 }
 0xe5c   :  { %v669_v62 = vrot.slane %v2205_v61, 2 }
 0xe5e   :  { %670 = vrot.lane.b32.xlu0 %v669_v62, %s1910_s28 }
 0xe5f   :  { %v939_v63 = vpop.permute.xlu2 %938 }
 0xe60   :  { %v2209_v0 = vmul.f32 %v939_v63, %v918_v47  ;;  %v814_v63 = vsel %vm808_vm4, %v2137_v1, %v2205_v61 }
 0xe62   :  { %943 = vrot.lane.b32.xlu1 %v2209_v0, %s1910_s28 }
 0xed0   :  { %v671_v6 = vpop.permute.xlu0 %670 }
 0xed1   :  { %1591 = vmatmul.msk.f32.vlgmr.msra.gmra.mxu1 %vm153_vm2, %v671_v6 }
 0xed2   :  { %1169 = vmatpush.msra.mxu1 %v2141_v2 }
 0xed4   :  { %1170 = vmatpush.msra.mxu1 %v2143_v3  ;;  %v944_v7 = vpop.permute.xlu1 %943 }
 0xed6   :  { %1171 = vmatpush.msra.mxu1 %v2147_v4 }
 0xed8   :  { %1172 = vmatpush.msra.mxu1 %v2153_v5 }
 0xed9   :  { %1601 = vmatmul.msk.f32.vlgmr.msrb.gmra.mxu1 %vm153_vm2, %v944_v7 }
 0xf4e   :  { %v691_v9 = vpop.f32.mrf.mxu1 }
 0xf4f   :  { %v695_v10 = vrot.slane %v691_v9, 4 }
 0xf51   :  { %v697_v12 = vadd.f32 %v695_v10, %v2089_v45 }
 0xf53   :  { %1695 = vtanh.f32 %v697_v12  ;;  %v1592_v18 = vmul.f32 -1.442695, %v697_v12 }
 0xf56   :  { %v964_v8 = vpop.f32.mrf.mxu1 }
 0xf57   :  { %v968_v14 = vrot.slane %v964_v8, 6 }
 0xf59   :  { %v1696_v15 = vpop.eup %1695  ;;  %v970_v16 = vadd.f32 %v968_v14, %v2185_v13 }
 0xf5a   :  { %723 = vrot.lane.b32.xlu2 %v1696_v15, %s1909_s2 }
 0xf5b   :  { %1697 = vtanh.f32 %v970_v16  ;;  %v1602_v23 = vmul.f32 -1.442695, %v970_v16 }
 0xf5c   :  { %1699 = vpow2.f32 %v1592_v18 }
 0xf61   :  { %v1698_v17 = vpop.eup %1697 }
 0xf62   :  { %996 = vrot.lane.b32.xlu0 %v1698_v17, %s1909_s2  ;;  %v1700_v19 = vpop.eup %1699 }
 0xf63   :  { %v701_v46 = vadd.f32 1.0, %v1700_v19 }
 0xf65   :  { %1701 = vrcp.f32 %v701_v46  ;;  %v713_v26 = vand.u32 2147483648, %v701_v46  ;;  %vm707_vm12 = vweird.f32 %v701_v46  ;;  %v711_v27 = vand.u32 2147483647, %v701_v46 }
 0xf66   :  { %1703 = vpow2.f32 %v1602_v23 }
 0xf67   :  { %v714_v30 = vor.u32 1.1754944e-38, %v713_v26  ;;  %vm712_vm14 = vcmp.eq.f32.partialorder %v711_v27, 8.507059e+37 }
 0xf6b   :  { %v1702_v20 = vpop.eup %1701 }
 0xf6c   :  { %v703_v21 = vmul.f32 %v1702_v20, %v701_v46  ;;  %vm708_vm11 = vweird.f32 %v1702_v20  ;;  %v1704_v28 = vpop.eup %1703 }
 0xf6d   :  { %vm709_vm13 = vmor %vm707_vm12, %vm708_vm11  ;;  %v974_v31 = vadd.f32 1.0, %v1704_v28 }
 0xf6e   :  { %v704_v22 = vsub.f32 1.0, %v703_v21 }
 0xf6f   :  { %1705 = vrcp.f32 %v974_v31  ;;  %v986_v40 = vand.u32 2147483648, %v974_v31  ;;  %vm980_vm0 = vweird.f32 %v974_v31  ;;  %v984_v41 = vand.u32 2147483647, %v974_v31 }
 0xf70   :  { %v705_v24 = vmul.f32 %v1702_v20, %v704_v22 }
 0xf71   :  { %v987_v43 = vor.u32 1.1754944e-38, %v986_v40  ;;  %vm985_vm3 = vcmp.eq.f32.partialorder %v984_v41, 8.507059e+37 }
 0xf72   :  { %v706_v25 = vadd.f32 %v1702_v20, %v705_v24 }
 0xf74   :  { %v710_v29 = vsel %vm709_vm13, %v1702_v20, %v706_v25 }
 0xf75   :  { %v715_v33 = vsel %vm712_vm14, %v714_v30, %v710_v29  ;;  %v1706_v35 = vpop.eup %1705 }
 0xf76   :  { %v976_v36 = vmul.f32 %v1706_v35, %v974_v31  ;;  %vm981_vm15 = vweird.f32 %v1706_v35  ;;  %v721_v50 = vmul.f32 %v719_v49, %v715_v33 }
 0xf77   :  { %vm982_vm1 = vmor %vm980_vm0, %vm981_vm15 }
 0xf78   :  { %v977_v37 = vsub.f32 1.0, %v976_v36 }
 0xf7a   :  { %v978_v38 = vmul.f32 %v1706_v35, %v977_v37 }
 0xf7c   :  { %v979_v39 = vadd.f32 %v1706_v35, %v978_v38 }
 0xf7e   :  { %v983_v42 = vsel %vm982_vm1, %v1706_v35, %v979_v39 }
 0xf7f   :  { %v988_v47 = vsel %vm985_vm3, %v987_v43, %v983_v42 }
 0xf80   :  { %v994_v55 = vmul.f32 %v992_v54, %v988_v47 }
 0xfb4   :  { %v724_v32 = vpop.permute.xlu2 %723 }
 0xfb5   :  { %v726_v34 = vmul.f32 %v724_v32, %v715_v33 }
 0xfb7   :  { %728 = vrot.lane.b32.xlu1 %v726_v34, %s1910_s28 }
 0xfd4   :  { %v997_v44 = vpop.permute.xlu0 %996 }
 0xfd5   :  { %v999_v48 = vmul.f32 %v997_v44, %v988_v47 }
 0xfd7   :  { %1001 = vrot.lane.b32.xlu2 %v999_v48, %s1910_s28 }
0x1029   :  { %v729_v51 = vpop.permute.xlu1 %728 }
0x102a   :  { %v2226_v52 = vadd.f32 %v729_v51, %v721_v50 }
0x102c   :  { %1707 = vtanh.f32 %v2226_v52 }
0x1031   :  { %v1002_v56 = vpop.permute.xlu2 %1001 }
0x1032   :  { %v1708_v57 = vpop.eup %1707  ;;  %v1004_v59 = vadd.f32 %v1002_v56, %v994_v55 }
0x1033   :  { %734 = vrot.lane.b32.xlu0 %v1708_v57, %s1909_s2 }
0x1034   :  { %1709 = vtanh.f32 %v1004_v59  ;;  %v1062_v30 = vrot.slane %v1004_v59, 6 }
0x103a   :  { %v1710_v60 = vpop.eup %1709 }
0x103b   :  { %1007 = vrot.lane.b32.xlu1 %v1710_v60, %s1909_s2 }
0x10a5   :  { %v735_v62 = vpop.permute.xlu0 %734 }
0x10a6   :  { %v737_v53 = vmul.f32 %v735_v62, %v715_v33 }
0x10a8   :  { %v739_v6 = vrot.slane %v737_v53, 4  ;;  %v2236_v7 = vsel %vm810_vm5, %v814_v63, %v737_v53  ;;  %v789_v53 = vrot.slane %v2226_v52, 6 }
0x10aa   :  { %740 = vrot.lane.b32.xlu2 %v739_v6, %s1910_s28 }
0x10ad   :  { %v1008_v58 = vpop.permute.xlu1 %1007 }
0x10ae   :  { %v2239_v9 = vmul.f32 %v1008_v58, %v988_v47 }
0x10b0   :  { %v1012_v10 = vrot.slane %v2239_v9, 2  ;;  %v1427_v43 = vsel %vm808_vm4, %v2209_v0, %v2239_v9 }
0x10b2   :  { %1013 = vrot.lane.b32.xlu0 %v1012_v10, %s1910_s28 }
0x1104   :  { %v741_v12 = vpop.permute.xlu2 %740 }
0x1105   :  { %1593 = vmatmul.msk.f32.vlgmr.msrb.gmra.mxu0 %vm153_vm2, %v741_v12 }
0x1106   :  { %1235 = vmatpush.msrb.mxu0 %v2141_v2 }
0x1108   :  { %1236 = vmatpush.msrb.mxu0 %v2143_v3 }
0x110a   :  { %1237 = vmatpush.msrb.mxu0 %v2147_v4 }
0x110c   :  { %1238 = vmatpush.msrb.mxu0 %v2153_v5 }
0x1124   :  { %v1014_v1 = vpop.permute.xlu0 %1013 }
0x1125   :  { %1603 = vmatmul.msk.f32.vlgmr.msra.gmra.mxu0 %vm153_vm2, %v1014_v1 }
0x1182   :  { %v761_v61 = vpop.f32.mrf.mxu0 }
0x1183   :  { %v765_v22 = vrot.slane %v761_v61, 2 }
0x1185   :  { %v767_v25 = vadd.f32 %v765_v22, %v2089_v45 }
0x1187   :  { %v1594_v45 = vmul.f32 -1.442695, %v767_v25 }
0x11a2   :  { %v1034_v8 = vpop.f32.mrf.mxu0 }
0x11a3   :  { %v1038_v14 = vrot.slane %v1034_v8, 4 }
0x11a5   :  { %v1040_v15 = vadd.f32 %v1038_v14, %v2185_v13 }
0x11a7   :  { %1711 = vtanh.f32 %v1040_v15  ;;  %v1604_v17 = vmul.f32 -1.442695, %v1040_v15 }
0x11a9   :  { %1713 = vpow2.f32 %v1604_v17 }
0x11ad   :  { %v1712_v16 = vpop.eup %1711 }
0x11ae   :  { %1066 = vrot.lane.b32.xlu1 %v1712_v16, %s1909_s2 }
0x11af   :  { %v1714_v2 = vpop.eup %1713 }
0x11b0   :  { %v1044_v3 = vadd.f32 1.0, %v1714_v2 }
0x11b2   :  { %1715 = vrcp.f32 %v1044_v3  ;;  %v1056_v20 = vand.u32 2147483648, %v1044_v3  ;;  %vm1050_vm7 = vweird.f32 %v1044_v3  ;;  %v1054_v21 = vand.u32 2147483647, %v1044_v3 }
0x11b3   :  { %1717 = vtanh.f32 %v767_v25 }
0x11b4   :  { %v1057_v24 = vor.u32 1.1754944e-38, %v1056_v20  ;;  %vm1055_vm9 = vcmp.eq.f32.partialorder %v1054_v21, 8.507059e+37 }
0x11b8   :  { %v1716_v4 = vpop.eup %1715 }
0x11b9   :  { %v1046_v18 = vmul.f32 %v1716_v4, %v1044_v3  ;;  %vm1051_vm6 = vweird.f32 %v1716_v4  ;;  %v1718_v29 = vpop.eup %1717 }
0x11ba   :  { %vm1052_vm8 = vmor %vm1050_vm7, %vm1051_vm6 }
0x11bb   :  { %v1047_v5 = vsub.f32 1.0, %v1046_v18 }
0x11bd   :  { %v1048_v19 = vmul.f32 %v1716_v4, %v1047_v5 }
0x11bf   :  { %v1049_v46 = vadd.f32 %v1716_v4, %v1048_v19 }
0x11c1   :  { %v1053_v23 = vsel %vm1052_vm8, %v1716_v4, %v1049_v46 }
0x11c2   :  { %v1058_v27 = vsel %vm1055_vm9, %v1057_v24, %v1053_v23 }
0x11c3   :  { %v1064_v31 = vmul.f32 %v1062_v30, %v1058_v27 }
0x1220   :  { %v1067_v26 = vpop.permute.xlu1 %1066 }
0x1221   :  { %v1069_v28 = vmul.f32 %v1067_v26, %v1058_v27 }
0x1223   :  { %1071 = vrot.lane.b32.xlu2 %v1069_v28, %s1910_s28 }
0x122b   :  { %793 = vrot.lane.b32.xlu2 %v1718_v29, %s1909_s2 }
0x127d   :  { %v1072_v32 = vpop.permute.xlu2 %1071 }
0x127e   :  { %v2254_v33 = vadd.f32 %v1072_v32, %v1064_v31 }
0x1280   :  { %1719 = vtanh.f32 %v2254_v33  ;;  %v1132_v21 = vrot.slane %v2254_v33, 6 }
0x1281   :  { %1721 = vpow2.f32 %v1594_v45 }
0x1285   :  { %v794_v55 = vpop.permute.xlu2 %793 }
0x1286   :  { %v1720_v34 = vpop.eup %1719 }
0x1287   :  { %1077 = vrot.lane.b32.xlu0 %v1720_v34, %s1909_s2  ;;  %v1722_v35 = vpop.eup %1721 }
0x1288   :  { %v771_v36 = vadd.f32 1.0, %v1722_v35 }
0x128a   :  { %1723 = vrcp.f32 %v771_v36  ;;  %v783_v49 = vand.u32 2147483648, %v771_v36  ;;  %vm777_vm12 = vweird.f32 %v771_v36  ;;  %v781_v50 = vand.u32 2147483647, %v771_v36 }
0x128c   :  { %v784_v54 = vor.u32 1.1754944e-38, %v783_v49  ;;  %vm782_vm14 = vcmp.eq.f32.partialorder %v781_v50, 8.507059e+37 }
0x1290   :  { %v1724_v37 = vpop.eup %1723 }
0x1291   :  { %v773_v38 = vmul.f32 %v1724_v37, %v771_v36  ;;  %vm778_vm11 = vweird.f32 %v1724_v37 }
0x1292   :  { %vm779_vm13 = vmor %vm777_vm12, %vm778_vm11 }
0x1293   :  { %v774_v39 = vsub.f32 1.0, %v773_v38 }
0x1295   :  { %v775_v40 = vmul.f32 %v1724_v37, %v774_v39 }
0x1297   :  { %v776_v44 = vadd.f32 %v1724_v37, %v775_v40 }
0x1299   :  { %v780_v51 = vsel %vm779_vm13, %v1724_v37, %v776_v44 }
0x129a   :  { %v785_v56 = vsel %vm782_vm14, %v784_v54, %v780_v51 }
0x129b   :  { %v796_v57 = vmul.f32 %v794_v55, %v785_v56  ;;  %v791_v6 = vmul.f32 %v789_v53, %v785_v56 }
0x12f9   :  { %v1078_v41 = vpop.permute.xlu0 %1077 }
0x12fa   :  { %v1080_v42 = vmul.f32 %v1078_v41, %v1058_v27 }
0x12fc   :  { %v1082_v47 = vrot.slane %v1080_v42, 4  ;;  %v2262_v48 = vsel %vm810_vm5, %v1427_v43, %v1080_v42 }
0x12fe   :  { %1083 = vrot.lane.b32.xlu1 %v1082_v47, %s1910_s28 }
0x1306   :  { %798 = vrot.lane.b32.xlu1 %v796_v57, %s1910_s28 }
0x1370   :  { %v1084_v0 = vpop.permute.xlu1 %1083 }
0x1371   :  { %1605 = vmatmul.msk.f32.vlgmr.msra.gmra.mxu3 %vm153_vm2, %v1084_v0 }
0x1378   :  { %v799_v63 = vpop.permute.xlu1 %798 }
0x1379   :  { %v2269_v58 = vadd.f32 %v799_v63, %v791_v6 }
0x13f4   :  { %v1104_v59 = vpop.f32.mrf.mxu3 }
0x13f5   :  { %v1108_v60 = vrot.slane %v1104_v59, 2 }
0x13f7   :  { %v1110_v62 = vadd.f32 %v1108_v60, %v2185_v13 }
0x13f9   :  { %1725 = vtanh.f32 %v1110_v62  ;;  %v1606_v12 = vmul.f32 -1.442695, %v1110_v62 }
0x13fa   :  { %1727 = vtanh.f32 %v2269_v58 }
0x13fb   :  { %1729 = vpow2.f32 %v1606_v12 }
0x13ff   :  { %v1726_v9 = vpop.eup %1725 }
0x1400   :  { %1136 = vrot.lane.b32.xlu0 %v1726_v9, %s1909_s2  ;;  %v1728_v10 = vpop.eup %1727 }
0x1401   :  { %v1730_v1 = vpop.eup %1729 }
0x1402   :  { %v1114_v61 = vadd.f32 1.0, %v1730_v1 }
0x1404   :  { %1731 = vrcp.f32 %v1114_v61  ;;  %v1126_v16 = vand.u32 2147483648, %v1114_v61  ;;  %vm1120_vm0 = vweird.f32 %v1114_v61  ;;  %v1124_v17 = vand.u32 2147483647, %v1114_v61 }
0x1406   :  { %v1127_v3 = vor.u32 1.1754944e-38, %v1126_v16  ;;  %vm1125_vm3 = vcmp.eq.f32.partialorder %v1124_v17, 8.507059e+37 }
0x1408   :  { %804 = vrot.lane.b32.xlu0 %v1728_v10, %s1909_s2 }
0x140a   :  { %v1732_v13 = vpop.eup %1731 }
0x140b   :  { %v1116_v52 = vmul.f32 %v1732_v13, %v1114_v61  ;;  %vm1121_vm15 = vweird.f32 %v1732_v13 }
0x140c   :  { %vm1122_vm1 = vmor %vm1120_vm0, %vm1121_vm15 }
0x140d   :  { %v1117_v8 = vsub.f32 1.0, %v1116_v52 }
0x140f   :  { %v1118_v14 = vmul.f32 %v1732_v13, %v1117_v8 }
0x1411   :  { %v1119_v15 = vadd.f32 %v1732_v13, %v1118_v14 }
0x1413   :  { %v1123_v2 = vsel %vm1122_vm1, %v1732_v13, %v1119_v15 }
0x1414   :  { %v1128_v18 = vsel %vm1125_vm3, %v1127_v3, %v1123_v2 }
0x1415   :  { %v1134_v22 = vmul.f32 %v1132_v21, %v1128_v18 }
0x1472   :  { %v1137_v4 = vpop.permute.xlu0 %1136 }
0x1473   :  { %v1139_v5 = vmul.f32 %v1137_v4, %v1128_v18 }
0x1475   :  { %1141 = vrot.lane.b32.xlu2 %v1139_v5, %s1910_s28 }
0x147a   :  { %v805_v19 = vpop.permute.xlu0 %804 }
0x147b   :  { %v2275_v46 = vmul.f32 %v805_v19, %v785_v56 }
0x147d   :  { %v816_v20 = vsel %vm812_vm10, %v2236_v7, %v2275_v46 }
0x147e   :  { %844 = vrot.lane.b32.xlu2 %v816_v20, %s1910_s28 }
0x14cf   :  { %v1142_v23 = vpop.permute.xlu2 %1141 }
0x14d0   :  { %v1144_v24 = vadd.f32 %v1142_v23, %v1134_v22 }
0x14d2   :  { %1733 = vtanh.f32 %v1144_v24  ;;  %v1199_v51 = vrot.slane %v1144_v24, 6 }
0x14d8   :  { %v1734_v25 = vpop.eup %1733  ;;  %v845_v26 = vpop.permute.xlu2 %844 }
0x14d9   :  { %1147 = vrot.lane.b32.xlu1 %v1734_v25, %s1909_s2  ;;  %1596 = vmatmul.msk.f32.gmra.mxu2 %vm153_vm2, %v845_v26 }
0x154b   :  { %v1148_v27 = vpop.permute.xlu1 %1147 }
0x154c   :  { %v1150_v28 = vmul.f32 %v1148_v27, %v1128_v18 }
0x154e   :  { %v1152_v29 = vrot.slane %v1150_v28, 6  ;;  %v2286_v7 = vsel %vm812_vm10, %v2262_v48, %v1150_v28 }
0x1550   :  { %1153 = vrot.lane.b32.xlu0 %v1152_v29, %s1910_s28 }
0x155c   :  { %v870_v31 = vpop.f32.mrf.mxu2 }
0x155d   :  { %v2291_v32 = vadd.f32 %v2181_v11, %v870_v31 }
0x15c2   :  { %v1154_v30 = vpop.permute.xlu0 %1153 }
0x15c3   :  { %1607 = vmatmul.msk.f32.vlgmr.msra.gmra.mxu1 %vm153_vm2, %v1154_v30 }
0x1640   :  { %v1174_v33 = vpop.f32.mrf.mxu1 }
0x1641   :  { %v1177_v34 = vadd.f32 %v1174_v33, %v2291_v32 }
0x1643   :  { %1735 = vtanh.f32 %v1177_v34  ;;  %v1608_v35 = vmul.f32 -1.442695, %v1177_v34 }
0x1645   :  { %1737 = vpow2.f32 %v1608_v35 }
0x1649   :  { %v1736_v45 = vpop.eup %1735 }
0x164a   :  { %1203 = vrot.lane.b32.xlu1 %v1736_v45, %s1909_s2 }
0x164b   :  { %v1738_v36 = vpop.eup %1737 }
0x164c   :  { %v1181_v37 = vadd.f32 1.0, %v1738_v36 }
0x164e   :  { %1739 = vrcp.f32 %v1181_v37  ;;  %v1193_v11 = vand.u32 2147483648, %v1181_v37  ;;  %vm1187_vm7 = vweird.f32 %v1181_v37  ;;  %v1191_v43 = vand.u32 2147483647, %v1181_v37 }
0x1650   :  { %v1194_v47 = vor.u32 1.1754944e-38, %v1193_v11  ;;  %vm1192_vm9 = vcmp.eq.f32.partialorder %v1191_v43, 8.507059e+37 }
0x1654   :  { %v1740_v38 = vpop.eup %1739 }
0x1655   :  { %v1183_v39 = vmul.f32 %v1740_v38, %v1181_v37  ;;  %vm1188_vm6 = vweird.f32 %v1740_v38 }
0x1656   :  { %vm1189_vm8 = vmor %vm1187_vm7, %vm1188_vm6 }
0x1657   :  { %v1184_v40 = vsub.f32 1.0, %v1183_v39 }
0x1659   :  { %v1185_v41 = vmul.f32 %v1740_v38, %v1184_v40 }
0x165b   :  { %v1186_v42 = vadd.f32 %v1740_v38, %v1185_v41 }
0x165d   :  { %v1190_v44 = vsel %vm1189_vm8, %v1740_v38, %v1186_v42  ;;  %vm821_vm8 = vcmask 261126  }
0x165e   :  { %v1195_v49 = vsel %vm1192_vm9, %v1194_v47, %v1190_v44 }
0x165f   :  { %v1201_v54 = vmul.f32 %v1199_v51, %v1195_v49 }
0x16bc   :  { %v1204_v48 = vpop.permute.xlu1 %1203 }
0x16bd   :  { %v1206_v50 = vmul.f32 %v1204_v48, %v1195_v49 }
0x16bf   :  { %1208 = vrot.lane.b32.xlu2 %v1206_v50, %s1910_s28 }
0x1719   :  { %v1209_v55 = vpop.permute.xlu2 %1208 }
0x171a   :  { %v1211_v56 = vadd.f32 %v1209_v55, %v1201_v54 }
0x171c   :  { %1741 = vtanh.f32 %v1211_v56  ;;  %v1268_v18 = vrot.slane %v1211_v56, 6 }
0x1722   :  { %v1742_v57 = vpop.eup %1741 }
0x1723   :  { %1214 = vrot.lane.b32.xlu0 %v1742_v57, %s1909_s2 }
0x1795   :  { %v1215_v0 = vpop.permute.xlu0 %1214 }
0x1796   :  { %v2297_v59 = vmul.f32 %v1215_v0, %v1195_v49 }
0x1798   :  { %1219 = vrot.lane.b32.xlu1 %v2297_v59, %s1910_s28 }
0x180a   :  { %v1220_v60 = vpop.permute.xlu1 %1219 }
0x180b   :  { %1609 = vmatmul.msk.f32.vlgmr.msrb.gmra.mxu0 %vm153_vm2, %v1220_v60 }
0x1888   :  { %v1240_v62 = vpop.f32.mrf.mxu0 }
0x1889   :  { %v1244_v53 = vrot.slane %v1240_v62, 6 }
0x188b   :  { %v1246_v63 = vadd.f32 %v1244_v53, %v2291_v32 }
0x188d   :  { %1743 = vtanh.f32 %v1246_v63  ;;  %v1610_v9 = vmul.f32 -1.442695, %v1246_v63 }
0x188f   :  { %1745 = vpow2.f32 %v1610_v9 }
0x1893   :  { %v1744_v6 = vpop.eup %1743 }
0x1894   :  { %1272 = vrot.lane.b32.xlu2 %v1744_v6, %s1909_s2 }
0x1895   :  { %v1746_v10 = vpop.eup %1745 }
0x1896   :  { %v1250_v12 = vadd.f32 1.0, %v1746_v10  ;;  %v1448_v10 = vld [vmem:[%s2380_s6 + $0x18] sm:$0xff] }
0x1897   :  { %1475 = vmatpush.msrb.mxu1 %v1448_v10 }
0x1898   :  { %1747 = vrcp.f32 %v1250_v12  ;;  %v1262_v14 = vand.u32 2147483648, %v1250_v12  ;;  %vm1256_vm12 = vweird.f32 %v1250_v12  ;;  %v1260_v15 = vand.u32 2147483647, %v1250_v12 }
0x189a   :  { %v1263_v17 = vor.u32 1.1754944e-38, %v1262_v14  ;;  %vm1261_vm14 = vcmp.eq.f32.partialorder %v1260_v15, 8.507059e+37 }
0x189e   :  { %v1748_v1 = vpop.eup %1747 }
0x189f   :  { %v1252_v61 = vmul.f32 %v1748_v1, %v1250_v12  ;;  %vm1257_vm11 = vweird.f32 %v1748_v1  ;;  %v1446_v12 = vld [vmem:[%s2380_s6 + $0x8] sm:$0xff] }
0x18a0   :  { %vm1258_vm13 = vmor %vm1256_vm12, %vm1257_vm11 }
0x18a1   :  { %v1253_v13 = vsub.f32 1.0, %v1252_v61 }
0x18a3   :  { %v1254_v52 = vmul.f32 %v1748_v1, %v1253_v13 }
0x18a5   :  { %v1255_v8 = vadd.f32 %v1748_v1, %v1254_v52 }
0x18a7   :  { %v1259_v16 = vsel %vm1258_vm13, %v1748_v1, %v1255_v8 }
0x18a8   :  { %v1264_v3 = vsel %vm1261_vm14, %v1263_v17, %v1259_v16 }
0x18a9   :  { %v1270_v5 = vmul.f32 %v1268_v18, %v1264_v3 }
0x18ee   :  { %v1273_v2 = vpop.permute.xlu2 %1272 }
0x18ef   :  { %v1275_v4 = vmul.f32 %v1273_v2, %v1264_v3 }
0x18f1   :  { %1277 = vrot.lane.b32.xlu0 %v1275_v4, %s1910_s28 }
0x1963   :  { %v1278_v19 = vpop.permute.xlu0 %1277 }
0x1964   :  { %v1280_v20 = vadd.f32 %v1278_v19, %v1270_v5 }
0x1966   :  { %1749 = vtanh.f32 %v1280_v20  ;;  %v1338_v44 = vrot.slane %v1280_v20, 6 }
0x196c   :  { %v1750_v21 = vpop.eup %1749 }
0x196d   :  { %1283 = vrot.lane.b32.xlu1 %v1750_v21, %s1909_s2 }
0x19df   :  { %v1284_v22 = vpop.permute.xlu1 %1283 }
0x19e0   :  { %v1286_v23 = vmul.f32 %v1284_v22, %v1264_v3 }
0x19e2   :  { %v1288_v24 = vrot.slane %v1286_v23, 2  ;;  %v1430_v55 = vsel %vm808_vm4, %v2297_v59, %v1286_v23  ;;  %v1638_v23 = vld [vmem:[%s2381_s7] ss:$0 sm:$0xff]  ;;  %s1912_s7 = smov [#allocation8]  }
0x19e3   :  { %s1529_s9 = sshll.u32 %s1912_s7, 4  ;;  %s1530_s9 = int_to_ptr.vmem [resolvable:$true] %s1529_s9 }
0x19e4   :  { %1289 = vrot.lane.b32.xlu2 %v1288_v24, %s1910_s28 }
0x1a3e   :  { %v1290_v25 = vpop.permute.xlu2 %1289 }
0x1a3f   :  { %1611 = vmatmul.msk.f32.vlgmr.msra.gmra.mxu2 %vm153_vm2, %v1290_v25 }
0x1ac2   :  { %v1310_v26 = vpop.f32.mrf.mxu2 }
0x1ac3   :  { %v1314_v27 = vrot.slane %v1310_v26, 4 }
0x1ac5   :  { %v1316_v28 = vadd.f32 %v1314_v27, %v2291_v32 }
0x1ac7   :  { %1751 = vtanh.f32 %v1316_v28  ;;  %v1612_v30 = vmul.f32 -1.442695, %v1316_v28 }
0x1ac9   :  { %1753 = vpow2.f32 %v1612_v30 }
0x1acd   :  { %v1752_v29 = vpop.eup %1751 }
0x1ace   :  { %1342 = vrot.lane.b32.xlu0 %v1752_v29, %s1909_s2 }
0x1acf   :  { %v1754_v31 = vpop.eup %1753 }
0x1ad0   :  { %v1320_v33 = vadd.f32 1.0, %v1754_v31 }
0x1ad2   :  { %1755 = vrcp.f32 %v1320_v33  ;;  %v1332_v38 = vand.u32 2147483648, %v1320_v33  ;;  %vm1326_vm0 = vweird.f32 %v1320_v33  ;;  %v1330_v39 = vand.u32 2147483647, %v1320_v33 }
0x1ad4   :  { %v1333_v41 = vor.u32 1.1754944e-38, %v1332_v38  ;;  %vm1331_vm3 = vcmp.eq.f32.partialorder %v1330_v39, 8.507059e+37 }
0x1ad8   :  { %v1756_v34 = vpop.eup %1755 }
0x1ad9   :  { %v1322_v45 = vmul.f32 %v1756_v34, %v1320_v33  ;;  %vm1327_vm15 = vweird.f32 %v1756_v34 }
0x1ada   :  { %vm1328_vm1 = vmor %vm1326_vm0, %vm1327_vm15 }
0x1adb   :  { %v1323_v35 = vsub.f32 1.0, %v1322_v45 }
0x1add   :  { %v1324_v36 = vmul.f32 %v1756_v34, %v1323_v35 }
0x1adf   :  { %v1325_v37 = vadd.f32 %v1756_v34, %v1324_v36 }
0x1ae1   :  { %v1329_v40 = vsel %vm1328_vm1, %v1756_v34, %v1325_v37 }
0x1ae2   :  { %v1334_v11 = vsel %vm1331_vm3, %v1333_v41, %v1329_v40 }
0x1ae3   :  { %v1340_v47 = vmul.f32 %v1338_v44, %v1334_v11 }
0x1b40   :  { %v1343_v42 = vpop.permute.xlu0 %1342 }
0x1b41   :  { %v1345_v43 = vmul.f32 %v1343_v42, %v1334_v11 }
0x1b43   :  { %1347 = vrot.lane.b32.xlu1 %v1345_v43, %s1910_s28 }
0x1bb5   :  { %v1348_v48 = vpop.permute.xlu1 %1347 }
0x1bb6   :  { %v1350_v49 = vadd.f32 %v1348_v48, %v1340_v47 }
0x1bb8   :  { %1757 = vtanh.f32 %v1350_v49  ;;  %v1408_v5 = vrot.slane %v1350_v49, 6 }
0x1bbe   :  { %v1758_v50 = vpop.eup %1757 }
0x1bbf   :  { %1353 = vrot.lane.b32.xlu2 %v1758_v50, %s1909_s2 }
0x1c19   :  { %v1354_v51 = vpop.permute.xlu2 %1353 }
0x1c1a   :  { %v1356_v54 = vmul.f32 %v1354_v51, %v1334_v11 }
0x1c1c   :  { %v1358_v56 = vrot.slane %v1356_v54, 4  ;;  %v1431_v57 = vsel %vm810_vm5, %v1430_v55, %v1356_v54 }
0x1c1e   :  { %1359 = vrot.lane.b32.xlu0 %v1358_v56, %s1910_s28 }
0x1c90   :  { %v1360_v0 = vpop.permute.xlu0 %1359 }
0x1c91   :  { %1613 = vmatmul.msk.f32.vlgmr.msrb.gmra.mxu3 %vm153_vm2, %v1360_v0 }
0x1d14   :  { %v1380_v60 = vpop.f32.mrf.mxu3 }
0x1d15   :  { %v1384_v62 = vrot.slane %v1380_v60, 2 }
0x1d17   :  { %v1386_v53 = vadd.f32 %v1384_v62, %v2291_v32  ;;  %v1447_v32 = vld [vmem:[%s2380_s6 + $0x10] sm:$0xff] }
0x1d18   :  { %1476 = vmatpush.msrb.mxu1 %v1447_v32 }
0x1d19   :  { %1759 = vtanh.f32 %v1386_v53  ;;  %v1614_v59 = vmul.f32 -1.442695, %v1386_v53 }
0x1d1a   :  { %1477 = vmatpush.msrb.mxu1 %v1446_v12 }
0x1d1b   :  { %1761 = vpow2.f32 %v1614_v59 }
0x1d1f   :  { %v1760_v63 = vpop.eup %1759 }
0x1d20   :  { %1412 = vrot.lane.b32.xlu1 %v1760_v63, %s1909_s2 }
0x1d21   :  { %v1762_v6 = vpop.eup %1761 }
0x1d22   :  { %v1390_v9 = vadd.f32 1.0, %v1762_v6 }
0x1d24   :  { %1763 = vrcp.f32 %v1390_v9  ;;  %v1402_v14 = vand.u32 2147483648, %v1390_v9  ;;  %vm1396_vm5 = vweird.f32 %v1390_v9  ;;  %v1400_v15 = vand.u32 2147483647, %v1390_v9 }
0x1d26   :  { %v1403_v17 = vor.u32 1.1754944e-38, %v1402_v14  ;;  %vm1401_vm7 = vcmp.eq.f32.partialorder %v1400_v15, 8.507059e+37 }
0x1d28   :  { %1455 = vrot.lane.b32.xlu1 %v2286_v7, %s1910_s28  ;;  %v1445_v7 = vld [vmem:[%s2380_s6] sm:$0xff] }
0x1d29   :  { %1478 = vmatpush.msrb.mxu1 %v1445_v7 }
0x1d2a   :  { %v1764_v1 = vpop.eup %1763 }
0x1d2b   :  { %v1392_v61 = vmul.f32 %v1764_v1, %v1390_v9  ;;  %vm1397_vm4 = vweird.f32 %v1764_v1 }
0x1d2c   :  { %vm1398_vm6 = vmor %vm1396_vm5, %vm1397_vm4 }
0x1d2d   :  { %v1393_v13 = vsub.f32 1.0, %v1392_v61 }
0x1d2f   :  { %v1394_v52 = vmul.f32 %v1764_v1, %v1393_v13 }
0x1d31   :  { %v1395_v8 = vadd.f32 %v1764_v1, %v1394_v52 }
0x1d33   :  { %v1399_v16 = vsel %vm1398_vm6, %v1764_v1, %v1395_v8 }
0x1d34   :  { %v1404_v3 = vsel %vm1401_vm7, %v1403_v17, %v1399_v16 }
0x1d35   :  { %v1410_v19 = vmul.f32 %v1408_v5, %v1404_v3 }
0x1d92   :  { %v1413_v2 = vpop.permute.xlu1 %1412 }
0x1d93   :  { %v1415_v4 = vmul.f32 %v1413_v2, %v1404_v3 }
0x1d95   :  { %1417 = vrot.lane.b32.xlu2 %v1415_v4, %s1910_s28 }
0x1d9a   :  { %v1456_v18 = vpop.permute.xlu1 %1455 }
0x1d9b   :  { %1615 = vmatmul.msk.f32.vlgmr.msrb.gmra.mxu1 %vm153_vm2, %v1456_v18 }
0x1def   :  { %v1418_v20 = vpop.permute.xlu2 %1417 }
0x1df0   :  { %v1420_v21 = vadd.f32 %v1418_v20, %v1410_v19 }
0x1df2   :  { %1765 = vtanh.f32 %v1420_v21 }
0x1df8   :  { %v1766_v22 = vpop.eup %1765 }
0x1df9   :  { %1423 = vrot.lane.b32.xlu0 %v1766_v22, %s1909_s2  ;;  %s1913_s2 = smov 2  }
0x1e18   :  { %v1480_v24 = vpop.f32.mrf.mxu1 }
0x1e19   :  { %v1481_v25 = vadd.f32 %v1638_v23, %v1480_v24 }
0x1e1b   :  { %v1486_v26 = vsel %vm153_vm2, %v1481_v25, -inf }
0x1e23   :  { %1487 = vmax.xlane.f32.xlu0 %v1486_v26 }
0x1e37   :  { %818 = vrot.lane.b32.xlu0 %v2275_v46, %s1910_s28 }
0x1e3f   :  { %1440 = vrot.lane.b32.xlu0 %v1420_v21, %s1911_s1 }
0x1e6b   :  { %v1424_v27 = vpop.permute.xlu0 %1423 }
0x1e6c   :  { %v1426_v28 = vmul.f32 %v1424_v27, %v1404_v3 }
0x1e6e   :  { %v1432_v29 = vsel %vm812_vm10, %v1431_v57, %v1426_v28 }
0x1e6f   :  { %1457 = vrot.lane.b32.xlu2 %v1432_v29, %s1910_s28 }
0x1e96   :  { %v1488_v30 = vpop.xlane.xlu0 %1487 }
0x1e97   :  { %v1492_v31 = vsub.f32 %v1481_v25, %v1488_v30 }
0x1e99   :  { %v1494_v33 = vmul.f32 1.442695, %v1492_v31 }
0x1e9b   :  { %1767 = vpow2.f32 %v1494_v33 }
0x1ea1   :  { %v1768_v34 = vpop.eup %1767 }
0x1ea2   :  { %v1498_v45 = vsel %vm153_vm2, %v1768_v34, 0.0 }
0x1ea3   :  { %1499 = vadd.xlane.f32.xlu2 %v1498_v45 }
0x1ea9   :  { %v819_v35 = vpop.permute.xlu0 %818 }
0x1eaa   :  { %822 = vst.msk [vmem:[#allocation8 - $0x6] sm:$0xc0] %vm821_vm8, %v819_v35 }
0x1eb1   :  { %v1441_v46 = vpop.permute.xlu0 %1440 }
0x1eb2   :  { %1444 = vst.msk [vmem:[#allocation10 - $0x4] sm:$0xc0] %vm821_vm8, %v1441_v46 }
0x1ec9   :  { %v1458_v36 = vpop.permute.xlu2 %1457 }
0x1eca   :  { %1616 = vmatmul.msk.f32.gmra.mxu1 %vm153_vm2, %v1458_v36 }
0x1f16   :  { %v1500_v37 = vpop.xlane.xlu2 %1499 }
0x1f17   :  { %1769 = vlog2.f32 %v1500_v37 }
0x1f1d   :  { %v1770_v38 = vpop.eup %1769 }
0x1f1e   :  { %v1505_v39 = vmul.f32 0.6931472, %v1770_v38 }
0x1f20   :  { %v1508_v40 = vsub.f32 %v1492_v31, %v1505_v39 }
0x1f22   :  { %1510 = vst.msk [vmem:[#allocation7] sm:$0xff] %vm153_vm2, %v1508_v40 }
0x1f47   :  { %v1483_v41 = vpop.f32.mrf.mxu1 }
0x1f48   :  { %v1484_v42 = vadd.f32 %v1638_v23, %v1483_v41 }
0x1f4a   :  { %v1489_v11 = vsel %vm153_vm2, %v1484_v42, -inf }
0x1f4b   :  { %1490 = vmax.xlane.f32.xlu1 %v1489_v11 }
0x1f64   :  { %1434 = vrot.lane.b32.xlu1 %v1426_v28, %s1910_s28 }
0x1fbe   :  { %v1491_v43 = vpop.xlane.xlu1 %1490 }
0x1fbf   :  { %v1493_v44 = vsub.f32 %v1484_v42, %v1491_v43 }
0x1fc1   :  { %v1496_v47 = vmul.f32 1.442695, %v1493_v44 }
0x1fc3   :  { %1771 = vpow2.f32 %v1496_v47 }
0x1fc9   :  { %v1772_v48 = vpop.eup %1771 }
0x1fca   :  { %v1501_v49 = vsel %vm153_vm2, %v1772_v48, 0.0 }
0x1fcb   :  { %1502 = vadd.xlane.f32.xlu2 %v1501_v49 }
0x1fd6   :  { %v1435_v50 = vpop.permute.xlu1 %1434 }
0x1fd7   :  { %1438 = vst.msk [vmem:[#allocation8 - $0x4] sm:$0xc0] %vm821_vm8, %v1435_v50 }
0x1fd8   :  { %1537 = dma.vmem_to_hbm [thread:$0]  %s1530_s9, 64, %s1532_s26, [#allocation9], %s1910_s28, %s1910_s28, %s1913_s2  }
0x1fe3   :  { %824 = vrot.lane.b32.xlu2 %v2269_v58, %s1911_s1 }
0x203e   :  { %v1503_v51 = vpop.xlane.xlu2 %1502 }
0x203f   :  { %1773 = vlog2.f32 %v1503_v51 }
0x2045   :  { %v1774_v54 = vpop.eup %1773 }
0x2046   :  { %v1507_v55 = vmul.f32 0.6931472, %v1774_v54  ;;  %v825_v56 = vpop.permute.xlu2 %824 }
0x2047   :  { %827 = vst.msk [vmem:[#allocation10 - $0x6] sm:$0xc0] %vm821_vm8, %v825_v56 }
0x2048   :  { %v1509_v58 = vsub.f32 %v1493_v44, %v1507_v55  ;;  %1550 = dma.vmem_to_hbm [thread:$0]  %s1543_s3, 64, %s1545_s15, [#allocation9], %s1910_s28, %s1910_s28, %s1913_s2  }
0x204a   :  { %1511 = vst.msk [vmem:[#allocation7 + $0x8] sm:$0xff] %vm153_vm2, %v1509_v58 }
0x204b   :  { %1524 = dma.vmem_to_hbm [thread:$0]  %s1517_s11, 256, %s1519_s5, [#allocation4], %s1904_s29, %s1904_s29, %s1905_s30  }
0x204c   :  { %1899 = dma.done.wait [#allocation4], 256  }
0x204d   :  { %1900 = vsyncadd [#allocation4], 4294967040 }
0x204e   :  { %1901 = dma.done.wait [#allocation9], 128  }
0x204f   :  { %1902 = vsyncadd [#allocation9], 4294967168 }
0x2050   :  { %1563 = vsyncpa [#allocation3], 1 }
0x2051   :  { %1564 = vsyncpa [#allocation6], 1 }
0x2052   :  { %1565 = vsyncpa [#allocation4], 1 }
0x2053   :  { %1566 = vsyncpa [#allocation9], 1 }

</bundles_post_ra>
